<compile_context>
chip_gen: v7x
topology: tpu7x:2x2x1
jax: 0.10.0
libtpu: 0.0.40
codegen_flags: <defaults>
</compile_context>

<pallas_src>
import functools

import jax
import jax.numpy as jnp
import numpy as np
from jax import lax
from jax.experimental import pallas as pl
from jax.experimental.pallas import tpu as pltpu

EPS = 1e-6  # LayerNorm eps in the Annotated-Transformer LayerNorm


def _layer_norm(x, a, b):
    # a * (x - mean) / (std + eps) + b   with torch-style unbiased std (N-1).
    d = x.shape[-1]
    mean = jnp.mean(x, axis=-1, keepdims=True)
    centered = x - mean
    var = jnp.sum(centered * centered, axis=-1, keepdims=True) * (1.0 / (d - 1))
    inv = pl.reciprocal(jnp.sqrt(var) + EPS, approx=True)   # EUP slot (~free)
    return a * centered * inv + b


def src_att_layer_kernel(
    x_ref, m_ref, mask_ref,
    ln1_a_ref, ln1_b_ref,
    wq_ref, bq_ref, wkv_ref, bkv_ref, wo_ref, bo_ref,
    ln2_a_ref, ln2_b_ref,
    w1_ref, b1_ref, w2_ref, b2_ref,
    out_ref,
    kv_scratch,
    *, num_heads):
    f32 = jnp.float32
    bf16 = jnp.bfloat16

    x = x_ref[0].astype(f32)            # (T, D)   current query tile
    mask = mask_ref[0]                  # (1, S)

    T, D = x.shape
    S = mask.shape[-1]
    dk = D // num_heads
    scale = 1.0 / float(np.sqrt(dk))

    # ---- per-batch K|V projection, computed once per b and cached -----------
    # Grid is (B "parallel", T-tiles "arbitrary"): for a fixed b the T-tiles run
    # sequentially on one core, so the scratch written at t == 0 is valid for
    # all later tiles of the same batch element.
    @pl.when(pl.program_id(1) == 0)
    def _():
        mem_b = m_ref[0].astype(bf16)                       # (S, D)
        kv = jnp.dot(mem_b, wkv_ref[...],
                     preferred_element_type=f32) + bkv_ref[...]
        kv_scratch[...] = kv.astype(bf16)                   # (S, 2D)

    # -------- sublayer 0: x + src_attn(LayerNorm(x), m, m, src_mask) ----------
    xn = _layer_norm(x, ln1_a_ref[...], ln1_b_ref[...])

    q = jnp.dot(xn.astype(bf16), wq_ref[...],
                preferred_element_type=f32) + bq_ref[...]
    q_b = (q * scale).astype(bf16)      # scale once in f32, single cast

    kv_b = kv_scratch[...]
    k_b = kv_b[:, :D]                   # (S, D)
    v_b = kv_b[:, D:]                   # (S, D)
    wo = wo_ref[...]                    # (D, D) bf16

    # Additive mask bias, hoisted out of the head loop (broadcast done once).
    mask_bias = jnp.where(mask == 0.0, f32(-1e9), f32(0.0))   # (1, S)
    mask_bias = jnp.broadcast_to(mask_bias, (T, S))

    # Per-head attention.  No concatenate: each head's context is projected
    # through its dk-row slab of Wo and accumulated in f32.
    attn = jnp.zeros((T, D), f32)
    for h in range(num_heads):          # static, unrolled (small H)
        sl = slice(h * dk, (h + 1) * dk)
        # scores = q_h . k_h^T with no explicit transpose (contract last dims)
        s = lax.dot_general(q_b[:, sl], k_b[:, sl],
                            (((1,), (1,)), ((), ())),
                            preferred_element_type=f32)       # (T, S)
        s = s + mask_bias
        s = s - jnp.max(s, axis=-1, keepdims=True)
        p = jnp.exp(s)
        p = p * pl.reciprocal(jnp.sum(p, axis=-1, keepdims=True), approx=True)
        ctx = jnp.dot(p.astype(bf16), v_b[:, sl],
                      preferred_element_type=f32)             # (T, dk)
        attn = attn + jnp.dot(ctx.astype(bf16), wo[sl, :],
                              preferred_element_type=f32)     # (T, D)
    attn = attn + bo_ref[...]

    x1 = x + attn                       # dropout == identity

    # -------- sublayer 1: x1 + feed_forward(LayerNorm(x1)) --------------------
    xn2 = _layer_norm(x1, ln2_a_ref[...], ln2_b_ref[...])
    h1 = jnp.dot(xn2.astype(bf16), w1_ref[...],
                 preferred_element_type=f32) + b1_ref[...]
    h1 = jnp.maximum(h1, 0.0)
    ff = jnp.dot(h1.astype(bf16), w2_ref[...],
                 preferred_element_type=f32) + b2_ref[...]

    out_ref[0] = (x1 + ff).astype(out_ref.dtype)


def src_att_layer(x, m, src_mask, params, num_heads, *, tile_t=None):
    B, T, D = x.shape
    S = m.shape[1]
    d_ff = params["w1"].shape[1]
    bf16 = jnp.bfloat16

    if tile_t is None:
        tile_t = 128 if (T % 128 == 0) else T
    assert T % tile_t == 0
    n_t = T // tile_t

    # Store weight matrices in bf16 at the pallas_call boundary (halves weight
    # VMEM, feeds the bf16-native MXU).  LayerNorm params and biases stay f32.
    wq = params["wq"].astype(bf16)
    wkv = jnp.concatenate([params["wk"], params["wv"]], axis=1).astype(bf16)
    bkv = jnp.concatenate([params["bk"], params["bv"]], axis=1)
    wo = params["wo"].astype(bf16)
    w1 = params["w1"].astype(bf16)
    w2 = params["w2"].astype(bf16)

    kernel = functools.partial(src_att_layer_kernel, num_heads=num_heads)

    def rep(shape):
        # whole-array block, same block for every grid step (stays resident)
        return pl.BlockSpec(shape, lambda b, t: (0,) * len(shape))

    in_specs = [
        pl.BlockSpec((1, tile_t, D), lambda b, t: (b, t, 0)),   # x
        pl.BlockSpec((1, S, D), lambda b, t: (b, 0, 0)),        # m (per-b)
        pl.BlockSpec((1, 1, S), lambda b, t: (b, 0, 0)),        # src_mask
        rep((1, D)), rep((1, D)),                               # ln1 a, b
        rep((D, D)), rep((1, D)),                               # Wq, bq
        rep((D, 2 * D)), rep((1, 2 * D)),                       # Wk|Wv, bk|bv
        rep((D, D)), rep((1, D)),                               # Wo, bo
        rep((1, D)), rep((1, D)),                               # ln2 a, b
        rep((D, d_ff)), rep((1, d_ff)),                         # W1, b1
        rep((d_ff, D)), rep((1, D)),                            # W2, b2
    ]

    return pl.pallas_call(
        kernel,
        out_shape=jax.ShapeDtypeStruct((B, T, D), x.dtype),
        grid=(B, n_t),
        in_specs=in_specs,
        out_specs=pl.BlockSpec((1, tile_t, D), lambda b, t: (b, t, 0)),
        scratch_shapes=[pltpu.VMEM((S, 2 * D), bf16)],          # cached K|V
        compiler_params=pltpu.CompilerParams(
            # b is parallel (megacore / v7x 2-TC); t must be sequential so the
            # per-b K|V scratch computed at t == 0 is reusable at t > 0.
            dimension_semantics=("parallel", "arbitrary"),
            vmem_limit_bytes=32 * 1024 * 1024),
    )(x, m, src_mask,
      params["ln1_a"], params["ln1_b"],
      wq, params["bq"], wkv, bkv, wo, params["bo"],
      params["ln2_a"], params["ln2_b"],
      w1, params["b1"], w2, params["b2"])


def reference(x, m, mask, params, num_heads):
    """Pure-JAX f32 reference mirroring the PyTorch module exactly."""
    B, T, D = x.shape
    S = m.shape[1]
    dk = D // num_heads

    def ln(z, a, b):
        mean = jnp.mean(z, -1, keepdims=True)
        var = jnp.sum((z - mean) ** 2, -1, keepdims=True) / (D - 1)
        return a * (z - mean) / (jnp.sqrt(var) + EPS) + b

    xn = ln(x, params["ln1_a"], params["ln1_b"])
    q = xn @ params["wq"] + params["bq"]
    k = m @ params["wk"] + params["bk"]
    v = m @ params["wv"] + params["bv"]
    q = q.reshape(B, T, num_heads, dk).transpose(0, 2, 1, 3)
    k = k.reshape(B, S, num_heads, dk).transpose(0, 2, 1, 3)
    v = v.reshape(B, S, num_heads, dk).transpose(0, 2, 1, 3)
    scores = jnp.einsum("bhtd,bhsd->bhts", q, k) / jnp.sqrt(jnp.float32(dk))
    scores = jnp.where(mask[:, None, :, :] == 0.0, -1e9, scores)
    p = jax.nn.softmax(scores, axis=-1)
    attn = jnp.einsum("bhts,bhsd->bhtd", p, v).transpose(0, 2, 1, 3).reshape(B, T, D)
    attn = attn @ params["wo"] + params["bo"]
    x1 = x + attn
    xn2 = ln(x1, params["ln2_a"], params["ln2_b"])
    ff = jnp.maximum(xn2 @ params["w1"] + params["b1"], 0.0) @ params["w2"] + params["b2"]
    return x1 + ff


if __name__ == "__main__":
    # D = 128 keeps the output last dim lane-dense (unmasked stores).
    # T = 16 with tile_t = 8 exercises the per-batch K|V-cache reuse path.
    B, T, S, D, H, DFF = 2, 16, 16, 128, 4, 256

    key = jax.random.PRNGKey(0)
    keys = jax.random.split(key, 16)

    def w(k, shape, scale=0.05):
        return (scale * jax.random.normal(k, shape)).astype(jnp.float32)

    params = dict(
        ln1_a=jnp.ones((1, D), jnp.float32), ln1_b=jnp.zeros((1, D), jnp.float32),
        wq=w(keys[0], (D, D)), bq=w(keys[1], (1, D)),
        wk=w(keys[2], (D, D)), bk=w(keys[3], (1, D)),
        wv=w(keys[4], (D, D)), bv=w(keys[5], (1, D)),
        wo=w(keys[6], (D, D)), bo=w(keys[7], (1, D)),
        ln2_a=jnp.ones((1, D), jnp.float32), ln2_b=jnp.zeros((1, D), jnp.float32),
        w1=w(keys[8], (D, DFF)), b1=w(keys[9], (1, DFF)),
        w2=w(keys[10], (DFF, D)), b2=w(keys[11], (1, D)),
    )

    x = jax.random.normal(keys[12], (B, T, D), jnp.float32)
    m = jax.random.normal(keys[13], (B, S, D), jnp.float32)
    mask = (jax.random.uniform(keys[14], (B, 1, S)) > 0.2).astype(jnp.float32)
    mask = mask.at[:, :, 0].set(1.0)  # guarantee at least one attendable position

    out = jax.block_until_ready(src_att_layer(x, m, mask, params, H, tile_t=8))
    ref = reference(x, m, mask, params, H)

    assert out.shape == (B, T, D)
    # bf16 MXU operands (f32 accumulation) vs a pure-f32 reference -> bf16-level
    # tolerance.
    assert np.allclose(np.asarray(out), np.asarray(ref), rtol=2e-2, atol=2e-2), (
        "Pallas kernel mismatch vs JAX reference")
    print("KERNEL_OK")
</pallas_src>

<mosaic_0001>
module attributes {stable_mosaic.version = 11 : i64} {
  func.func @src_att_layer_kernel(%arg0: i32, %arg1: i32, %arg2: memref<1x8x128xf32, #tpu.memory_space<vmem>>, %arg3: memref<1x16x128xf32, #tpu.memory_space<vmem>>, %arg4: memref<1x1x16xf32, #tpu.memory_space<vmem>>, %arg5: memref<1x128xf32, #tpu.memory_space<vmem>>, %arg6: memref<1x128xf32, #tpu.memory_space<vmem>>, %arg7: memref<128x128xbf16, #tpu.memory_space<vmem>>, %arg8: memref<1x128xf32, #tpu.memory_space<vmem>>, %arg9: memref<128x256xbf16, #tpu.memory_space<vmem>>, %arg10: memref<1x256xf32, #tpu.memory_space<vmem>>, %arg11: memref<128x128xbf16, #tpu.memory_space<vmem>>, %arg12: memref<1x128xf32, #tpu.memory_space<vmem>>, %arg13: memref<1x128xf32, #tpu.memory_space<vmem>>, %arg14: memref<1x128xf32, #tpu.memory_space<vmem>>, %arg15: memref<128x256xbf16, #tpu.memory_space<vmem>>, %arg16: memref<1x256xf32, #tpu.memory_space<vmem>>, %arg17: memref<256x128xbf16, #tpu.memory_space<vmem>>, %arg18: memref<1x128xf32, #tpu.memory_space<vmem>>, %arg19: memref<1x8x128xf32, #tpu.memory_space<vmem>>, %arg20: memref<16x256xbf16, #tpu.memory_space<vmem>>) attributes {dimension_semantics = [#tpu.dimension_semantics<parallel>, #tpu.dimension_semantics<arbitrary>], iteration_bounds = array<i64: 2, 2>, scalar_prefetch = 0 : i64, scratch_operands = 1 : i64, tpu.core_type = #tpu.core_type<tc>, window_params = [{transform_indices = @transform_0, window_bounds = array<i64: 1, 8, 128>}, {transform_indices = @transform_1, window_bounds = array<i64: 1, 16, 128>}, {transform_indices = @transform_2, window_bounds = array<i64: 1, 1, 16>}, {pipeline_mode = #tpu.pipeline_mode<synchronous>, transform_indices = @transform_3, window_bounds = array<i64: 1, 128>}, {pipeline_mode = #tpu.pipeline_mode<synchronous>, transform_indices = @transform_4, window_bounds = array<i64: 1, 128>}, {pipeline_mode = #tpu.pipeline_mode<synchronous>, transform_indices = @transform_5, window_bounds = array<i64: 128, 128>}, {pipeline_mode = #tpu.pipeline_mode<synchronous>, transform_indices = @transform_6, window_bounds = array<i64: 1, 128>}, {pipeline_mode = #tpu.pipeline_mode<synchronous>, transform_indices = @transform_7, window_bounds = array<i64: 128, 256>}, {pipeline_mode = #tpu.pipeline_mode<synchronous>, transform_indices = @transform_8, window_bounds = array<i64: 1, 256>}, {pipeline_mode = #tpu.pipeline_mode<synchronous>, transform_indices = @transform_9, window_bounds = array<i64: 128, 128>}, {pipeline_mode = #tpu.pipeline_mode<synchronous>, transform_indices = @transform_10, window_bounds = array<i64: 1, 128>}, {pipeline_mode = #tpu.pipeline_mode<synchronous>, transform_indices = @transform_11, window_bounds = array<i64: 1, 128>}, {pipeline_mode = #tpu.pipeline_mode<synchronous>, transform_indices = @transform_12, window_bounds = array<i64: 1, 128>}, {pipeline_mode = #tpu.pipeline_mode<synchronous>, transform_indices = @transform_13, window_bounds = array<i64: 128, 256>}, {pipeline_mode = #tpu.pipeline_mode<synchronous>, transform_indices = @transform_14, window_bounds = array<i64: 1, 256>}, {pipeline_mode = #tpu.pipeline_mode<synchronous>, transform_indices = @transform_15, window_bounds = array<i64: 256, 128>}, {pipeline_mode = #tpu.pipeline_mode<synchronous>, transform_indices = @transform_16, window_bounds = array<i64: 1, 128>}, {transform_indices = @transform_17, window_bounds = array<i64: 1, 8, 128>}]} {
    %c0 = arith.constant 0 : index
    %c0_0 = arith.constant 0 : index
    %c0_1 = arith.constant 0 : index
    %0 = vector.load %arg2[%c0, %c0_0, %c0_1] : memref<1x8x128xf32, #tpu.memory_space<vmem>>, vector<1x8x128xf32>
    %1 = vector.shape_cast %0 : vector<1x8x128xf32> to vector<8x128xf32>
    %c0_2 = arith.constant 0 : index
    %c0_3 = arith.constant 0 : index
    %c0_4 = arith.constant 0 : index
    %2 = vector.load %arg4[%c0_2, %c0_3, %c0_4] : memref<1x1x16xf32, #tpu.memory_space<vmem>>, vector<1x1x16xf32>
    %3 = vector.shape_cast %2 : vector<1x1x16xf32> to vector<1x16xf32>
    %c0_i32 = arith.constant 0 : i32
    %4 = arith.cmpi eq, %arg1, %c0_i32 : i32
    %5 = arith.extui %4 : i1 to i32
    %c0_i32_5 = arith.constant 0 : i32
    %6 = arith.cmpi ne, %5, %c0_i32_5 : i32
    scf.if %6 {
      %c0_73 = arith.constant 0 : index
      %c0_74 = arith.constant 0 : index
      %c0_75 = arith.constant 0 : index
      %180 = vector.load %arg3[%c0_73, %c0_74, %c0_75] : memref<1x16x128xf32, #tpu.memory_space<vmem>>, vector<1x16x128xf32>
      %181 = vector.shape_cast %180 : vector<1x16x128xf32> to vector<16x128xf32>
      %182 = arith.truncf %181 : vector<16x128xf32> to vector<16x128xbf16>
      %c0_76 = arith.constant 0 : index
      %c0_77 = arith.constant 0 : index
      %183 = vector.load %arg9[%c0_76, %c0_77] : memref<128x256xbf16, #tpu.memory_space<vmem>>, vector<128x256xbf16>
      %cst_78 = arith.constant dense<0.000000e+00> : vector<16x256xf32>
      %184 = tpu.matmul %182, %183, %cst_78 {dimension_numbers = #tpu.dot_dimension_numbers<[1], [0], [0], [1], [0, 0, 1, 1], [], []>} : vector<16x128xbf16>, vector<128x256xbf16>, vector<16x256xf32> -> vector<16x256xf32>
      %c0_79 = arith.constant 0 : index
      %c0_80 = arith.constant 0 : index
      %185 = vector.load %arg10[%c0_79, %c0_80] : memref<1x256xf32, #tpu.memory_space<vmem>>, vector<1x256xf32>
      %186 = vector.broadcast %185 : vector<1x256xf32> to vector<16x256xf32>
      %187 = arith.addf %184, %186 : vector<16x256xf32>
      %188 = arith.truncf %187 : vector<16x256xf32> to vector<16x256xbf16>
      %c0_81 = arith.constant 0 : index
      %c0_82 = arith.constant 0 : index
      %189 = vector.load %arg20[%c0_81, %c0_82] : memref<16x256xbf16, #tpu.memory_space<vmem>>, vector<16x256xbf16>
      tpu.vector_store %arg20[%c0_81, %c0_82], %188 {strides = array<i32>} : memref<16x256xbf16, #tpu.memory_space<vmem>>, vector<16x256xbf16>,
    } else {
    }
    %c0_6 = arith.constant 0 : index
    %c0_7 = arith.constant 0 : index
    %7 = vector.load %arg5[%c0_6, %c0_7] : memref<1x128xf32, #tpu.memory_space<vmem>>, vector<1x128xf32>
    %c0_8 = arith.constant 0 : index
    %c0_9 = arith.constant 0 : index
    %8 = vector.load %arg6[%c0_8, %c0_9] : memref<1x128xf32, #tpu.memory_space<vmem>>, vector<1x128xf32>
    %cst = arith.constant dense<0.000000e+00> : vector<8xf32>
    %9 = vector.multi_reduction <add>, %1, %cst [1] : vector<8x128xf32> to vector<8xf32>
    %10 = vector.shape_cast %9 : vector<8xf32> to vector<8x1xf32>
    %cst_10 = arith.constant 1.280000e+02 : f32
    %11 = vector.broadcast %cst_10 : f32 to vector<8x1xf32>
    %12 = arith.divf %10, %11 : vector<8x1xf32>
    %13 = vector.broadcast %12 : vector<8x1xf32> to vector<8x128xf32>
    %14 = arith.subf %1, %13 : vector<8x128xf32>
    %15 = arith.mulf %14, %14 : vector<8x128xf32>
    %cst_11 = arith.constant dense<0.000000e+00> : vector<8xf32>
    %16 = vector.multi_reduction <add>, %15, %cst_11 [1] : vector<8x128xf32> to vector<8xf32>
    %17 = vector.shape_cast %16 : vector<8xf32> to vector<8x1xf32>
    %cst_12 = arith.constant 0.00787401571 : f32
    %18 = vector.broadcast %cst_12 : f32 to vector<8x1xf32>
    %19 = arith.mulf %17, %18 : vector<8x1xf32>
    %20 = math.sqrt %19 : vector<8x1xf32>
    %cst_13 = arith.constant 9.99999997E-7 : f32
    %21 = vector.broadcast %cst_13 : f32 to vector<8x1xf32>
    %22 = arith.addf %20, %21 : vector<8x1xf32>
    %23 = tpu.reciprocal %22 {approx = true} : vector<8x1xf32> -> vector<8x1xf32>
    %24 = vector.broadcast %7 : vector<1x128xf32> to vector<8x128xf32>
    %25 = arith.mulf %24, %14 : vector<8x128xf32>
    %26 = vector.broadcast %23 : vector<8x1xf32> to vector<8x128xf32>
    %27 = arith.mulf %25, %26 : vector<8x128xf32>
    %28 = vector.broadcast %8 : vector<1x128xf32> to vector<8x128xf32>
    %29 = arith.addf %27, %28 : vector<8x128xf32>
    %30 = arith.truncf %29 : vector<8x128xf32> to vector<8x128xbf16>
    %c0_14 = arith.constant 0 : index
    %c0_15 = arith.constant 0 : index
    %31 = vector.load %arg7[%c0_14, %c0_15] : memref<128x128xbf16, #tpu.memory_space<vmem>>, vector<128x128xbf16>
    %cst_16 = arith.constant dense<0.000000e+00> : vector<8x128xf32>
    %32 = tpu.matmul %30, %31, %cst_16 {dimension_numbers = #tpu.dot_dimension_numbers<[1], [0], [0], [1], [0, 0, 1, 1], [], []>} : vector<8x128xbf16>, vector<128x128xbf16>, vector<8x128xf32> -> vector<8x128xf32>
    %c0_17 = arith.constant 0 : index
    %c0_18 = arith.constant 0 : index
    %33 = vector.load %arg8[%c0_17, %c0_18] : memref<1x128xf32, #tpu.memory_space<vmem>>, vector<1x128xf32>
    %34 = vector.broadcast %33 : vector<1x128xf32> to vector<8x128xf32>
    %35 = arith.addf %32, %34 : vector<8x128xf32>
    %cst_19 = arith.constant 0.176776692 : f32
    %36 = vector.broadcast %cst_19 : f32 to vector<8x128xf32>
    %37 = arith.mulf %35, %36 : vector<8x128xf32>
    %38 = arith.truncf %37 : vector<8x128xf32> to vector<8x128xbf16>
    %c0_20 = arith.constant 0 : index
    %c0_21 = arith.constant 0 : index
    %39 = vector.load %arg20[%c0_20, %c0_21] : memref<16x256xbf16, #tpu.memory_space<vmem>>, vector<16x256xbf16>
    %40 = vector.extract_strided_slice %39 {offsets = [0, 0], sizes = [16, 128], strides = [1, 1]} : vector<16x256xbf16> to vector<16x128xbf16>
    %41 = vector.extract_strided_slice %39 {offsets = [0, 128], sizes = [16, 128], strides = [1, 1]} : vector<16x256xbf16> to vector<16x128xbf16>
    %c0_22 = arith.constant 0 : index
    %c0_23 = arith.constant 0 : index
    %42 = vector.load %arg11[%c0_22, %c0_23] : memref<128x128xbf16, #tpu.memory_space<vmem>>, vector<128x128xbf16>
    %cst_24 = arith.constant 0.000000e+00 : f32
    %43 = vector.broadcast %cst_24 : f32 to vector<1x16xf32>
    %44 = arith.cmpf oeq, %3, %43 : vector<1x16xf32>
    %cst_25 = arith.constant -1.000000e+09 : f32
    %cst_26 = arith.constant 0.000000e+00 : f32
    %45 = vector.broadcast %cst_25 : f32 to vector<1x16xf32>
    %46 = vector.broadcast %cst_26 : f32 to vector<1x16xf32>
    %47 = arith.select %44, %45, %46 : vector<1x16xi1>, vector<1x16xf32>
    %48 = vector.shape_cast %47 : vector<1x16xf32> to vector<1x16xf32>
    %49 = vector.broadcast %48 : vector<1x16xf32> to vector<8x16xf32>
    %cst_27 = arith.constant 0.000000e+00 : f32
    %50 = vector.broadcast %cst_27 : f32 to vector<8x128xf32>
    %51 = vector.extract_strided_slice %38 {offsets = [0, 0], sizes = [8, 32], strides = [1, 1]} : vector<8x128xbf16> to vector<8x32xbf16>
    %52 = vector.extract_strided_slice %40 {offsets = [0, 0], sizes = [16, 32], strides = [1, 1]} : vector<16x128xbf16> to vector<16x32xbf16>
    %cst_28 = arith.constant dense<0.000000e+00> : vector<8x16xf32>
    %53 = tpu.matmul %51, %52, %cst_28 {dimension_numbers = #tpu.dot_dimension_numbers<[1], [1], [0], [0], [0, 0, 1, 0], [], []>} : vector<8x32xbf16>, vector<16x32xbf16>, vector<8x16xf32> -> vector<8x16xf32>
    %54 = arith.addf %53, %49 : vector<8x16xf32>
    %cst_29 = arith.constant dense<0xFF800000> : vector<8xf32>
    %55 = vector.multi_reduction <maximumf>, %54, %cst_29 [1] : vector<8x16xf32> to vector<8xf32>
    %56 = vector.shape_cast %55 : vector<8xf32> to vector<8x1xf32>
    %57 = vector.broadcast %56 : vector<8x1xf32> to vector<8x16xf32>
    %58 = arith.subf %54, %57 : vector<8x16xf32>
    %59 = math.exp %58 : vector<8x16xf32>
    %cst_30 = arith.constant dense<0.000000e+00> : vector<8xf32>
    %60 = vector.multi_reduction <add>, %59, %cst_30 [1] : vector<8x16xf32> to vector<8xf32>
    %61 = vector.shape_cast %60 : vector<8xf32> to vector<8x1xf32>
    %62 = tpu.reciprocal %61 {approx = true} : vector<8x1xf32> -> vector<8x1xf32>
    %63 = vector.broadcast %62 : vector<8x1xf32> to vector<8x16xf32>
    %64 = arith.mulf %59, %63 : vector<8x16xf32>
    %65 = arith.truncf %64 : vector<8x16xf32> to vector<8x16xbf16>
    %66 = vector.extract_strided_slice %41 {offsets = [0, 0], sizes = [16, 32], strides = [1, 1]} : vector<16x128xbf16> to vector<16x32xbf16>
    %cst_31 = arith.constant dense<0.000000e+00> : vector<8x32xf32>
    %67 = tpu.matmul %65, %66, %cst_31 {dimension_numbers = #tpu.dot_dimension_numbers<[1], [0], [0], [1], [0, 0, 1, 1], [], []>} : vector<8x16xbf16>, vector<16x32xbf16>, vector<8x32xf32> -> vector<8x32xf32>
    %68 = arith.truncf %67 : vector<8x32xf32> to vector<8x32xbf16>
    %69 = vector.extract_strided_slice %42 {offsets = [0, 0], sizes = [32, 128], strides = [1, 1]} : vector<128x128xbf16> to vector<32x128xbf16>
    %cst_32 = arith.constant dense<0.000000e+00> : vector<8x128xf32>
    %70 = tpu.matmul %68, %69, %cst_32 {dimension_numbers = #tpu.dot_dimension_numbers<[1], [0], [0], [1], [0, 0, 1, 1], [], []>} : vector<8x32xbf16>, vector<32x128xbf16>, vector<8x128xf32> -> vector<8x128xf32>
    %71 = arith.addf %50, %70 : vector<8x128xf32>
    %72 = vector.extract_strided_slice %38 {offsets = [0, 32], sizes = [8, 32], strides = [1, 1]} : vector<8x128xbf16> to vector<8x32xbf16>
    %73 = vector.extract_strided_slice %40 {offsets = [0, 32], sizes = [16, 32], strides = [1, 1]} : vector<16x128xbf16> to vector<16x32xbf16>
    %cst_33 = arith.constant dense<0.000000e+00> : vector<8x16xf32>
    %74 = tpu.matmul %72, %73, %cst_33 {dimension_numbers = #tpu.dot_dimension_numbers<[1], [1], [0], [0], [0, 0, 1, 0], [], []>} : vector<8x32xbf16>, vector<16x32xbf16>, vector<8x16xf32> -> vector<8x16xf32>
    %75 = arith.addf %74, %49 : vector<8x16xf32>
    %cst_34 = arith.constant dense<0xFF800000> : vector<8xf32>
    %76 = vector.multi_reduction <maximumf>, %75, %cst_34 [1] : vector<8x16xf32> to vector<8xf32>
    %77 = vector.shape_cast %76 : vector<8xf32> to vector<8x1xf32>
    %78 = vector.broadcast %77 : vector<8x1xf32> to vector<8x16xf32>
    %79 = arith.subf %75, %78 : vector<8x16xf32>
    %80 = math.exp %79 : vector<8x16xf32>
    %cst_35 = arith.constant dense<0.000000e+00> : vector<8xf32>
    %81 = vector.multi_reduction <add>, %80, %cst_35 [1] : vector<8x16xf32> to vector<8xf32>
    %82 = vector.shape_cast %81 : vector<8xf32> to vector<8x1xf32>
    %83 = tpu.reciprocal %82 {approx = true} : vector<8x1xf32> -> vector<8x1xf32>
    %84 = vector.broadcast %83 : vector<8x1xf32> to vector<8x16xf32>
    %85 = arith.mulf %80, %84 : vector<8x16xf32>
    %86 = arith.truncf %85 : vector<8x16xf32> to vector<8x16xbf16>
    %87 = vector.extract_strided_slice %41 {offsets = [0, 32], sizes = [16, 32], strides = [1, 1]} : vector<16x128xbf16> to vector<16x32xbf16>
    %cst_36 = arith.constant dense<0.000000e+00> : vector<8x32xf32>
    %88 = tpu.matmul %86, %87, %cst_36 {dimension_numbers = #tpu.dot_dimension_numbers<[1], [0], [0], [1], [0, 0, 1, 1], [], []>} : vector<8x16xbf16>, vector<16x32xbf16>, vector<8x32xf32> -> vector<8x32xf32>
    %89 = arith.truncf %88 : vector<8x32xf32> to vector<8x32xbf16>
    %90 = vector.extract_strided_slice %42 {offsets = [32, 0], sizes = [32, 128], strides = [1, 1]} : vector<128x128xbf16> to vector<32x128xbf16>
    %cst_37 = arith.constant dense<0.000000e+00> : vector<8x128xf32>
    %91 = tpu.matmul %89, %90, %cst_37 {dimension_numbers = #tpu.dot_dimension_numbers<[1], [0], [0], [1], [0, 0, 1, 1], [], []>} : vector<8x32xbf16>, vector<32x128xbf16>, vector<8x128xf32> -> vector<8x128xf32>
    %92 = arith.addf %71, %91 : vector<8x128xf32>
    %93 = vector.extract_strided_slice %38 {offsets = [0, 64], sizes = [8, 32], strides = [1, 1]} : vector<8x128xbf16> to vector<8x32xbf16>
    %94 = vector.extract_strided_slice %40 {offsets = [0, 64], sizes = [16, 32], strides = [1, 1]} : vector<16x128xbf16> to vector<16x32xbf16>
    %cst_38 = arith.constant dense<0.000000e+00> : vector<8x16xf32>
    %95 = tpu.matmul %93, %94, %cst_38 {dimension_numbers = #tpu.dot_dimension_numbers<[1], [1], [0], [0], [0, 0, 1, 0], [], []>} : vector<8x32xbf16>, vector<16x32xbf16>, vector<8x16xf32> -> vector<8x16xf32>
    %96 = arith.addf %95, %49 : vector<8x16xf32>
    %cst_39 = arith.constant dense<0xFF800000> : vector<8xf32>
    %97 = vector.multi_reduction <maximumf>, %96, %cst_39 [1] : vector<8x16xf32> to vector<8xf32>
    %98 = vector.shape_cast %97 : vector<8xf32> to vector<8x1xf32>
    %99 = vector.broadcast %98 : vector<8x1xf32> to vector<8x16xf32>
    %100 = arith.subf %96, %99 : vector<8x16xf32>
    %101 = math.exp %100 : vector<8x16xf32>
    %cst_40 = arith.constant dense<0.000000e+00> : vector<8xf32>
    %102 = vector.multi_reduction <add>, %101, %cst_40 [1] : vector<8x16xf32> to vector<8xf32>
    %103 = vector.shape_cast %102 : vector<8xf32> to vector<8x1xf32>
    %104 = tpu.reciprocal %103 {approx = true} : vector<8x1xf32> -> vector<8x1xf32>
    %105 = vector.broadcast %104 : vector<8x1xf32> to vector<8x16xf32>
    %106 = arith.mulf %101, %105 : vector<8x16xf32>
    %107 = arith.truncf %106 : vector<8x16xf32> to vector<8x16xbf16>
    %108 = vector.extract_strided_slice %41 {offsets = [0, 64], sizes = [16, 32], strides = [1, 1]} : vector<16x128xbf16> to vector<16x32xbf16>
    %cst_41 = arith.constant dense<0.000000e+00> : vector<8x32xf32>
    %109 = tpu.matmul %107, %108, %cst_41 {dimension_numbers = #tpu.dot_dimension_numbers<[1], [0], [0], [1], [0, 0, 1, 1], [], []>} : vector<8x16xbf16>, vector<16x32xbf16>, vector<8x32xf32> -> vector<8x32xf32>
    %110 = arith.truncf %109 : vector<8x32xf32> to vector<8x32xbf16>
    %111 = vector.extract_strided_slice %42 {offsets = [64, 0], sizes = [32, 128], strides = [1, 1]} : vector<128x128xbf16> to vector<32x128xbf16>
    %cst_42 = arith.constant dense<0.000000e+00> : vector<8x128xf32>
    %112 = tpu.matmul %110, %111, %cst_42 {dimension_numbers = #tpu.dot_dimension_numbers<[1], [0], [0], [1], [0, 0, 1, 1], [], []>} : vector<8x32xbf16>, vector<32x128xbf16>, vector<8x128xf32> -> vector<8x128xf32>
    %113 = arith.addf %92, %112 : vector<8x128xf32>
    %114 = vector.extract_strided_slice %38 {offsets = [0, 96], sizes = [8, 32], strides = [1, 1]} : vector<8x128xbf16> to vector<8x32xbf16>
    %115 = vector.extract_strided_slice %40 {offsets = [0, 96], sizes = [16, 32], strides = [1, 1]} : vector<16x128xbf16> to vector<16x32xbf16>
    %cst_43 = arith.constant dense<0.000000e+00> : vector<8x16xf32>
    %116 = tpu.matmul %114, %115, %cst_43 {dimension_numbers = #tpu.dot_dimension_numbers<[1], [1], [0], [0], [0, 0, 1, 0], [], []>} : vector<8x32xbf16>, vector<16x32xbf16>, vector<8x16xf32> -> vector<8x16xf32>
    %117 = arith.addf %116, %49 : vector<8x16xf32>
    %cst_44 = arith.constant dense<0xFF800000> : vector<8xf32>
    %118 = vector.multi_reduction <maximumf>, %117, %cst_44 [1] : vector<8x16xf32> to vector<8xf32>
    %119 = vector.shape_cast %118 : vector<8xf32> to vector<8x1xf32>
    %120 = vector.broadcast %119 : vector<8x1xf32> to vector<8x16xf32>
    %121 = arith.subf %117, %120 : vector<8x16xf32>
    %122 = math.exp %121 : vector<8x16xf32>
    %cst_45 = arith.constant dense<0.000000e+00> : vector<8xf32>
    %123 = vector.multi_reduction <add>, %122, %cst_45 [1] : vector<8x16xf32> to vector<8xf32>
    %124 = vector.shape_cast %123 : vector<8xf32> to vector<8x1xf32>
    %125 = tpu.reciprocal %124 {approx = true} : vector<8x1xf32> -> vector<8x1xf32>
    %126 = vector.broadcast %125 : vector<8x1xf32> to vector<8x16xf32>
    %127 = arith.mulf %122, %126 : vector<8x16xf32>
    %128 = arith.truncf %127 : vector<8x16xf32> to vector<8x16xbf16>
    %129 = vector.extract_strided_slice %41 {offsets = [0, 96], sizes = [16, 32], strides = [1, 1]} : vector<16x128xbf16> to vector<16x32xbf16>
    %cst_46 = arith.constant dense<0.000000e+00> : vector<8x32xf32>
    %130 = tpu.matmul %128, %129, %cst_46 {dimension_numbers = #tpu.dot_dimension_numbers<[1], [0], [0], [1], [0, 0, 1, 1], [], []>} : vector<8x16xbf16>, vector<16x32xbf16>, vector<8x32xf32> -> vector<8x32xf32>
    %131 = arith.truncf %130 : vector<8x32xf32> to vector<8x32xbf16>
    %132 = vector.extract_strided_slice %42 {offsets = [96, 0], sizes = [32, 128], strides = [1, 1]} : vector<128x128xbf16> to vector<32x128xbf16>
    %cst_47 = arith.constant dense<0.000000e+00> : vector<8x128xf32>
    %133 = tpu.matmul %131, %132, %cst_47 {dimension_numbers = #tpu.dot_dimension_numbers<[1], [0], [0], [1], [0, 0, 1, 1], [], []>} : vector<8x32xbf16>, vector<32x128xbf16>, vector<8x128xf32> -> vector<8x128xf32>
    %134 = arith.addf %113, %133 : vector<8x128xf32>
    %c0_48 = arith.constant 0 : index
    %c0_49 = arith.constant 0 : index
    %135 = vector.load %arg12[%c0_48, %c0_49] : memref<1x128xf32, #tpu.memory_space<vmem>>, vector<1x128xf32>
    %136 = vector.broadcast %135 : vector<1x128xf32> to vector<8x128xf32>
    %137 = arith.addf %134, %136 : vector<8x128xf32>
    %138 = arith.addf %1, %137 : vector<8x128xf32>
    %c0_50 = arith.constant 0 : index
    %c0_51 = arith.constant 0 : index
    %139 = vector.load %arg13[%c0_50, %c0_51] : memref<1x128xf32, #tpu.memory_space<vmem>>, vector<1x128xf32>
    %c0_52 = arith.constant 0 : index
    %c0_53 = arith.constant 0 : index
    %140 = vector.load %arg14[%c0_52, %c0_53] : memref<1x128xf32, #tpu.memory_space<vmem>>, vector<1x128xf32>
    %cst_54 = arith.constant dense<0.000000e+00> : vector<8xf32>
    %141 = vector.multi_reduction <add>, %138, %cst_54 [1] : vector<8x128xf32> to vector<8xf32>
    %142 = vector.shape_cast %141 : vector<8xf32> to vector<8x1xf32>
    %cst_55 = arith.constant 1.280000e+02 : f32
    %143 = vector.broadcast %cst_55 : f32 to vector<8x1xf32>
    %144 = arith.divf %142, %143 : vector<8x1xf32>
    %145 = vector.broadcast %144 : vector<8x1xf32> to vector<8x128xf32>
    %146 = arith.subf %138, %145 : vector<8x128xf32>
    %147 = arith.mulf %146, %146 : vector<8x128xf32>
    %cst_56 = arith.constant dense<0.000000e+00> : vector<8xf32>
    %148 = vector.multi_reduction <add>, %147, %cst_56 [1] : vector<8x128xf32> to vector<8xf32>
    %149 = vector.shape_cast %148 : vector<8xf32> to vector<8x1xf32>
    %cst_57 = arith.constant 0.00787401571 : f32
    %150 = vector.broadcast %cst_57 : f32 to vector<8x1xf32>
    %151 = arith.mulf %149, %150 : vector<8x1xf32>
    %152 = math.sqrt %151 : vector<8x1xf32>
    %cst_58 = arith.constant 9.99999997E-7 : f32
    %153 = vector.broadcast %cst_58 : f32 to vector<8x1xf32>
    %154 = arith.addf %152, %153 : vector<8x1xf32>
    %155 = tpu.reciprocal %154 {approx = true} : vector<8x1xf32> -> vector<8x1xf32>
    %156 = vector.broadcast %139 : vector<1x128xf32> to vector<8x128xf32>
    %157 = arith.mulf %156, %146 : vector<8x128xf32>
    %158 = vector.broadcast %155 : vector<8x1xf32> to vector<8x128xf32>
    %159 = arith.mulf %157, %158 : vector<8x128xf32>
    %160 = vector.broadcast %140 : vector<1x128xf32> to vector<8x128xf32>
    %161 = arith.addf %159, %160 : vector<8x128xf32>
    %162 = arith.truncf %161 : vector<8x128xf32> to vector<8x128xbf16>
    %c0_59 = arith.constant 0 : index
    %c0_60 = arith.constant 0 : index
    %163 = vector.load %arg15[%c0_59, %c0_60] : memref<128x256xbf16, #tpu.memory_space<vmem>>, vector<128x256xbf16>
    %cst_61 = arith.constant dense<0.000000e+00> : vector<8x256xf32>
    %164 = tpu.matmul %162, %163, %cst_61 {dimension_numbers = #tpu.dot_dimension_numbers<[1], [0], [0], [1], [0, 0, 1, 1], [], []>} : vector<8x128xbf16>, vector<128x256xbf16>, vector<8x256xf32> -> vector<8x256xf32>
    %c0_62 = arith.constant 0 : index
    %c0_63 = arith.constant 0 : index
    %165 = vector.load %arg16[%c0_62, %c0_63] : memref<1x256xf32, #tpu.memory_space<vmem>>, vector<1x256xf32>
    %166 = vector.broadcast %165 : vector<1x256xf32> to vector<8x256xf32>
    %167 = arith.addf %164, %166 : vector<8x256xf32>
    %cst_64 = arith.constant 0.000000e+00 : f32
    %168 = vector.broadcast %cst_64 : f32 to vector<8x256xf32>
    %169 = arith.maximumf %167, %168 : vector<8x256xf32>
    %170 = arith.truncf %169 : vector<8x256xf32> to vector<8x256xbf16>
    %c0_65 = arith.constant 0 : index
    %c0_66 = arith.constant 0 : index
    %171 = vector.load %arg17[%c0_65, %c0_66] : memref<256x128xbf16, #tpu.memory_space<vmem>>, vector<256x128xbf16>
    %cst_67 = arith.constant dense<0.000000e+00> : vector<8x128xf32>
    %172 = tpu.matmul %170, %171, %cst_67 {dimension_numbers = #tpu.dot_dimension_numbers<[1], [0], [0], [1], [0, 0, 1, 1], [], []>} : vector<8x256xbf16>, vector<256x128xbf16>, vector<8x128xf32> -> vector<8x128xf32>
    %c0_68 = arith.constant 0 : index
    %c0_69 = arith.constant 0 : index
    %173 = vector.load %arg18[%c0_68, %c0_69] : memref<1x128xf32, #tpu.memory_space<vmem>>, vector<1x128xf32>
    %174 = vector.broadcast %173 : vector<1x128xf32> to vector<8x128xf32>
    %175 = arith.addf %172, %174 : vector<8x128xf32>
    %176 = arith.addf %138, %175 : vector<8x128xf32>
    %c0_70 = arith.constant 0 : index
    %c0_71 = arith.constant 0 : index
    %c0_72 = arith.constant 0 : index
    %177 = vector.load %arg19[%c0_70, %c0_71, %c0_72] : memref<1x8x128xf32, #tpu.memory_space<vmem>>, vector<1x8x128xf32>
    %178 = vector.shape_cast %177 : vector<1x8x128xf32> to vector<8x128xf32>
    %179 = vector.shape_cast %176 : vector<8x128xf32> to vector<1x8x128xf32>
    tpu.vector_store %arg19[%c0_70, %c0_71, %c0_72], %179 {strides = array<i32>} : memref<1x8x128xf32, #tpu.memory_space<vmem>>, vector<1x8x128xf32>,
    return
  }
  func.func @transform_0(%arg0: i32, %arg1: i32) -> (i32, i32, i32) {
    %c0_i32 = arith.constant 0 : i32
    %c0_i32_0 = arith.constant 0 : i32
    return %arg0, %arg1, %c0_i32 : i32, i32, i32
  }
  func.func @transform_1(%arg0: i32, %arg1: i32) -> (i32, i32, i32) {
    %c0_i32 = arith.constant 0 : i32
    %c0_i32_0 = arith.constant 0 : i32
    %c0_i32_1 = arith.constant 0 : i32
    return %arg0, %c0_i32, %c0_i32_0 : i32, i32, i32
  }
  func.func @transform_2(%arg0: i32, %arg1: i32) -> (i32, i32, i32) {
    %c0_i32 = arith.constant 0 : i32
    %c0_i32_0 = arith.constant 0 : i32
    %c0_i32_1 = arith.constant 0 : i32
    return %arg0, %c0_i32, %c0_i32_0 : i32, i32, i32
  }
  func.func @transform_3(%arg0: i32, %arg1: i32) -> (i32, i32) {
    %c0_i32 = arith.constant 0 : i32
    %c0_i32_0 = arith.constant 0 : i32
    %c0_i32_1 = arith.constant 0 : i32
    return %c0_i32, %c0_i32_0 : i32, i32
  }
  func.func @transform_4(%arg0: i32, %arg1: i32) -> (i32, i32) {
    %c0_i32 = arith.constant 0 : i32
    %c0_i32_0 = arith.constant 0 : i32
    %c0_i32_1 = arith.constant 0 : i32
    return %c0_i32, %c0_i32_0 : i32, i32
  }
  func.func @transform_5(%arg0: i32, %arg1: i32) -> (i32, i32) {
    %c0_i32 = arith.constant 0 : i32
    %c0_i32_0 = arith.constant 0 : i32
    %c0_i32_1 = arith.constant 0 : i32
    return %c0_i32, %c0_i32_0 : i32, i32
  }
  func.func @transform_6(%arg0: i32, %arg1: i32) -> (i32, i32) {
    %c0_i32 = arith.constant 0 : i32
    %c0_i32_0 = arith.constant 0 : i32
    %c0_i32_1 = arith.constant 0 : i32
    return %c0_i32, %c0_i32_0 : i32, i32
  }
  func.func @transform_7(%arg0: i32, %arg1: i32) -> (i32, i32) {
    %c0_i32 = arith.constant 0 : i32
    %c0_i32_0 = arith.constant 0 : i32
    %c0_i32_1 = arith.constant 0 : i32
    return %c0_i32, %c0_i32_0 : i32, i32
  }
  func.func @transform_8(%arg0: i32, %arg1: i32) -> (i32, i32) {
    %c0_i32 = arith.constant 0 : i32
    %c0_i32_0 = arith.constant 0 : i32
    %c0_i32_1 = arith.constant 0 : i32
    return %c0_i32, %c0_i32_0 : i32, i32
  }
  func.func @transform_9(%arg0: i32, %arg1: i32) -> (i32, i32) {
    %c0_i32 = arith.constant 0 : i32
    %c0_i32_0 = arith.constant 0 : i32
    %c0_i32_1 = arith.constant 0 : i32
    return %c0_i32, %c0_i32_0 : i32, i32
  }
  func.func @transform_10(%arg0: i32, %arg1: i32) -> (i32, i32) {
    %c0_i32 = arith.constant 0 : i32
    %c0_i32_0 = arith.constant 0 : i32
    %c0_i32_1 = arith.constant 0 : i32
    return %c0_i32, %c0_i32_0 : i32, i32
  }
  func.func @transform_11(%arg0: i32, %arg1: i32) -> (i32, i32) {
    %c0_i32 = arith.constant 0 : i32
    %c0_i32_0 = arith.constant 0 : i32
    %c0_i32_1 = arith.constant 0 : i32
    return %c0_i32, %c0_i32_0 : i32, i32
  }
  func.func @transform_12(%arg0: i32, %arg1: i32) -> (i32, i32) {
    %c0_i32 = arith.constant 0 : i32
    %c0_i32_0 = arith.constant 0 : i32
    %c0_i32_1 = arith.constant 0 : i32
    return %c0_i32, %c0_i32_0 : i32, i32
  }
  func.func @transform_13(%arg0: i32, %arg1: i32) -> (i32, i32) {
    %c0_i32 = arith.constant 0 : i32
    %c0_i32_0 = arith.constant 0 : i32
    %c0_i32_1 = arith.constant 0 : i32
    return %c0_i32, %c0_i32_0 : i32, i32
  }
  func.func @transform_14(%arg0: i32, %arg1: i32) -> (i32, i32) {
    %c0_i32 = arith.constant 0 : i32
    %c0_i32_0 = arith.constant 0 : i32
    %c0_i32_1 = arith.constant 0 : i32
    return %c0_i32, %c0_i32_0 : i32, i32
  }
  func.func @transform_15(%arg0: i32, %arg1: i32) -> (i32, i32) {
    %c0_i32 = arith.constant 0 : i32
    %c0_i32_0 = arith.constant 0 : i32
    %c0_i32_1 = arith.constant 0 : i32
    return %c0_i32, %c0_i32_0 : i32, i32
  }
  func.func @transform_16(%arg0: i32, %arg1: i32) -> (i32, i32) {
    %c0_i32 = arith.constant 0 : i32
    %c0_i32_0 = arith.constant 0 : i32
    %c0_i32_1 = arith.constant 0 : i32
    return %c0_i32, %c0_i32_0 : i32, i32
  }
  func.func @transform_17(%arg0: i32, %arg1: i32) -> (i32, i32, i32) {
    %c0_i32 = arith.constant 0 : i32
    %c0_i32_0 = arith.constant 0 : i32
    return %arg0, %arg1, %c0_i32 : i32, i32, i32
  }
}

</mosaic_0001>

<bundles_post_ra>
// kernel: tpu_custom_call.1
= control target key start
LH: loop header
LB: loop body
LE: loop exit
PB: predicated region body
PF: predicated region fallthrough
CT: control target
= control target key end

     0   :  { %s3894_s0 = inlined_call_operand.hbm [shape: f32[2,16,128], index: 0, kind: input, shape index: {}]   ;;  %s3895_s1 = inlined_call_operand.hbm [shape: f32[2,16,128], index: 1, kind: input, shape index: {}]   ;;  %s3896_s2 = inlined_call_operand.vmem [shape: f32[2,1,16], index: 2, kind: input, shape index: {}]   ;;  %s3897_s3 = inlined_call_operand.vmem [shape: f32[1,128], index: 3, kind: input, shape index: {}]   ;;  %s3898_s4 = inlined_call_operand.vmem [shape: f32[1,128], index: 4, kind: input, shape index: {}]   ;;  %s3899_s5 = inlined_call_operand.hbm [shape: bf16[128,128], index: 5, kind: input, shape index: {}]   ;;  %s3900_s6 = inlined_call_operand.vmem [shape: f32[1,128], index: 6, kind: input, shape index: {}]   ;;  %s3901_s7 = inlined_call_operand.hbm [shape: bf16[128,256], index: 7, kind: input, shape index: {}]   ;;  %s3902_s8 = inlined_call_operand.vmem [shape: f32[1,256], index: 8, kind: input, shape index: {}]   ;;  %s3903_s9 = inlined_call_operand.hbm [shape: bf16[128,128], index: 9, kind: input, shape index: {}]   ;;  %s3904_s10 = inlined_call_operand.vmem [shape: f32[1,128], index: 10, kind: input, shape index: {}]   ;;  %s3905_s11 = inlined_call_operand.vmem [shape: f32[1,128], index: 11, kind: input, shape index: {}]   ;;  %s3906_s12 = inlined_call_operand.vmem [shape: f32[1,128], index: 12, kind: input, shape index: {}]   ;;  %s3907_s13 = inlined_call_operand.hbm [shape: bf16[128,256], index: 13, kind: input, shape index: {}]   ;;  %s3908_s14 = inlined_call_operand.vmem [shape: f32[1,256], index: 14, kind: input, shape index: {}]   ;;  %s3909_s15 = inlined_call_operand.hbm [shape: bf16[256,128], index: 15, kind: input, shape index: {}]   ;;  %s3910_s16 = inlined_call_operand.vmem [shape: f32[1,128], index: 16, kind: input, shape index: {}]   ;;  %s3911_s17 = inlined_call_operand.hbm [shape: f32[2,16,128], index: 17, kind: output, shape index: {}]  }
   0x1   :  { %3930 = sst [smem:[#allocation26_spill]] %s3894_s0 }
   0x2   :  { %3931 = sst [smem:[#allocation27_spill]] %s3895_s1 }
   0x3   :  { %3932 = sst [smem:[#allocation28_spill]] %s3896_s2 }
   0x4   :  { %3933 = sst [smem:[#allocation29_spill]] %s3897_s3 }
   0x5   :  { %3934 = sst [smem:[#allocation30_spill]] %s3898_s4 }
   0x6   :  { %3935 = sst [smem:[#allocation31_spill]] %s3899_s5 }
   0x7   :  { %3936 = sst [smem:[#allocation32_spill]] %s3900_s6 }
   0x8   :  { %3937 = sst [smem:[#allocation33_spill]] %s3901_s7 }
   0x9   :  { %3938 = sst [smem:[#allocation34_spill]] %s3902_s8 }
   0xa   :  { %3939 = sst [smem:[#allocation35_spill]] %s3903_s9 }
   0xb   :  { %3940 = sst [smem:[#allocation36_spill]] %s3904_s10 }
   0xc   :  { %3941 = sst [smem:[#allocation37_spill]] %s3905_s11 }
   0xd   :  { %3942 = sst [smem:[#allocation38_spill]] %s3906_s12 }
   0xe   :  { %3943 = sst [smem:[#allocation39_spill]] %s3907_s13 }
   0xf   :  { %3944 = sst [smem:[#allocation40_spill]] %s3908_s14 }
  0x10   :  { %3945 = sst [smem:[#allocation41_spill]] %s3909_s15 }
  0x11   :  { %3946 = sst [smem:[#allocation42_spill]] %s3910_s16 }
  0x12   :  { %3947 = sst [smem:[#allocation43_spill]] %s3911_s17 }
  0x13   :  { %22 = vsyncpa [#allocation4], 0 }
  0x14   :  { %24 = vsyncpa [#allocation4 + $0x1], 0 }
  0x15   :  { %25 = vsyncpa [#allocation7], 0 }
  0x16   :  { %27 = vsyncpa [#allocation7 + $0x1], 0 }
  0x17   :  { %28 = vsyncpa [#allocation10], 0 }
  0x18   :  { %29 = vsyncpa [#allocation13], 0 }
  0x19   :  { %30 = vsyncpa [#allocation5], 0 }
  0x1a   :  { %32 = vsyncpa [#allocation5 + $0x1], 0  ;;  %s3253_s24 = smov 0   ;;  %s3255_s25 = smov 0  }
  0x1b   :  { %s3257_s26 = smov 0   ;;  %s3259_s27 = smov 0  }
  0x1c   :  { %s3261_s28 = smov 0   ;;  %s3263_s29 = smov 0  }
  0x1d   :  { %s3265_s0 = smov 0   ;;  %s3267_s30 = smov 0  }
  0x1e   :  { %s3269_s18 = smov 0   ;;  %s3271_s19 = smov 0  }
  0x1f   :  { %s3273_s1 = smov 0  }
  0x20 LB: > { %3948 = sst [smem:[#allocation22_spill]] %s3126_s0  ;;  %s3309_s20 = sadd.s32 4294967295, %s3142_s1   ;;  %s3142_s1 = sphi %s3273_s1, %s38_s1   ;;  %s3138_s19 = sphi %s3271_s19, %s4014_s19   ;;  %s3134_s18 = sphi %s3269_s18, %s4013_s18   ;;  %s3130_s30 = sphi %s3267_s30, %s4012_s30   ;;  %s3126_s0 = sphi %s3265_s0, %s4011_s0   ;;  %s3122_s29 = sphi %s3263_s29, %s4010_s29   ;;  %s3118_s28 = sphi %s3261_s28, %s4009_s28   ;;  %s3114_s27 = sphi %s3259_s27, %s4008_s27   ;;  %s3110_s26 = sphi %s3257_s26, %s4007_s26   ;;  %s3106_s25 = sphi %s3255_s25, %s4006_s25   ;;  %s3102_s24 = sphi %s3253_s24, %s4005_s24  }
  0x21   : > { %3949 = sst [smem:[#allocation23_spill]] %s3130_s30  ;;  %p2260_p0 = scmp.ge.s32.totalorder %s3142_s1, 1 }
  0x22   : > { %p3915_p1 = scmp.eq.s32.totalorder %s3309_s20, 0  ;;  %p457_p2 = scmp.lt.s32.totalorder %s3142_s1, 5 }
  0x23   : > { %s3144_s22 = smov [#allocation8]   ;;  %s3145_s16 = smov [#allocation9]  }
  0x24   : > { %p3314_p3 = pnand %p2260_p0, %p457_p2  ;;  %s475_s23 = sshll.u32 %s3144_s22, 4  ;;  %s476_s23 = int_to_ptr.vmem [resolvable:$true] %s475_s23 }
  0x25   : > { %s491_s14 = sshll.u32 %s3145_s16, 4  ;;  %s3952_s5 = sld [smem:[#allocation31_spill]]  ;;  %s3326_s14 = int_to_ptr.vmem [resolvable:$true] %s491_s14 }
  0x26   : > { %s3950_s21 = scalar_select %p3314_p3, 1, 0 }
  0x27   : > { %p2557_p4 = pneg %p3314_p3 }
  0x29   : > { %p3322_p5 = pnand %p2557_p4, %p3915_p1 }
  0x2b   : > { %s2804_s10 = scalar_lea.hbm %s3952_s5, 1024  ;;  %p3336_p7 = pneg %p3322_p5 }
  0x2c   : > { %p2805_p6 = scmp.ne.s32.totalorder %s3952_s5, %s2804_s10  ;;  %p2811_p10 = scmp.lt.u32.totalorder %s2804_s10, %s3952_s5 }
  0x2e   : > { %p2807_p8 = pnand %p3336_p7, %p2805_p6 }
  0x30   : > { %p2808_p9 = pneg %p2807_p8 }
  0x32   : > { %p2813_p11 = pnand %p2811_p10, %p2808_p9 }
  0x34   : > { %2816 = shalt.err (!%p2813_p11)
}
  0x35   : > { %s2817_s11 = scalar_lea.vmem %s476_s23, 1024  ;;  %p2825_p2 = scmp.lt.s32.totalorder %s476_s23, %s476_s23 }
  0x36   : > { %p2818_p12 = scmp.ne.s32.totalorder %s476_s23, %s2817_s11  ;;  %p2826_p4 = scmp.lt.s32.totalorder %s2817_s11, %s2817_s11 }
  0x38   : > { %p2820_p13 = pnand %p2818_p12, %p3336_p7  ;;  %p2827_p1 = por %p2826_p4, %p2825_p2 }
  0x3a   : > { %p2821_p0 = pneg %p2820_p13 }
  0x3c   : > { %p2828_p3 = pnand %p2827_p1, %p2821_p0 }
  0x3e   : > { %2831 = shalt.err (!%p2828_p3)
}
  0x3f   : > { %s3918_s4 = smov 64   ;;  %s3920_s6 = smov 4  }
  0x40   : > { %2560 = dma.hbm_to_vmem [thread:$0]  (!%p3322_p5), %s3952_s5, 1024, %s476_s23, [#allocation7], %s3918_s4, %s3918_s4, %s3920_s6  }
  0x41   : > { %s3954_s7 = sld [smem:[#allocation33_spill]] }
  0x47   : > { %s2832_s8 = scalar_lea.hbm %s3954_s7, 2048 }
  0x48   : > { %p2833_p1 = scmp.ne.s32.totalorder %s3954_s7, %s2832_s8  ;;  %p2839_p8 = scmp.lt.u32.totalorder %s2832_s8, %s3954_s7 }
  0x4a   : > { %p2835_p3 = pnand %p2833_p1, %p3336_p7 }
  0x4c   : > { %p2836_p6 = pneg %p2835_p3 }
  0x4e   : > { %p2841_p9 = pnand %p2839_p8, %p2836_p6 }
  0x50   : > { %2844 = shalt.err (!%p2841_p9)
}
  0x51   : > { %s2845_s23 = scalar_lea.vmem %s3326_s14, 2048  ;;  %p2853_p13 = scmp.lt.s32.totalorder %s3326_s14, %s3326_s14 }
  0x52   : > { %p2846_p10 = scmp.ne.s32.totalorder %s3326_s14, %s2845_s23  ;;  %p2854_p0 = scmp.lt.s32.totalorder %s2845_s23, %s2845_s23 }
  0x54   : > { %p2848_p11 = pnand %p2846_p10, %p3336_p7  ;;  %p2855_p2 = por %p2854_p0, %p2853_p13 }
  0x56   : > { %p2849_p12 = pneg %p2848_p11 }
  0x58   : > { %p2856_p4 = pnand %p2855_p2, %p2849_p12 }
  0x5a   : > { %2859 = shalt.err (!%p2856_p4)
}
  0x5b   : > { %s3922_s0 = smov 128   ;;  %s3923_s2 = smov 8  }
  0x5c   : > { %2563 = dma.hbm_to_vmem [thread:$0]  (!%p3322_p5), %s3954_s7, 2048, %s3326_s14, [#allocation10], %s3922_s0, %s3922_s0, %s3923_s2  }
  0x5d   : > { %s3150_s3 = smov [#allocation12]   ;;  %s3151_s12 = smov [#allocation11]  }
  0x5e   : > { %s529_s10 = sshll.u32 %s3150_s3, 4  ;;  %s507_s16 = sshll.u32 %s3151_s12, 4  ;;  %s530_s10 = int_to_ptr.vmem [resolvable:$true] %s529_s10  ;;  %s3381_s16 = int_to_ptr.vmem [resolvable:$true] %s507_s16 }
  0x5f   : > { %s3955_s13 = sld [smem:[#allocation39_spill]] }
  0x65   : > { %s2860_s4 = scalar_lea.hbm %s3955_s13, 2048 }
  0x66   : > { %p2861_p1 = scmp.ne.s32.totalorder %s3955_s13, %s2860_s4  ;;  %p2867_p8 = scmp.lt.u32.totalorder %s2860_s4, %s3955_s13 }
  0x68   : > { %p2863_p3 = pnand %p2861_p1, %p3336_p7 }
  0x6a   : > { %p2864_p6 = pneg %p2863_p3 }
  0x6c   : > { %p2869_p9 = pnand %p2867_p8, %p2864_p6 }
  0x6e   : > { %2872 = shalt.err (!%p2869_p9)
}
  0x6f   : > { %s2873_s30 = scalar_lea.vmem %s530_s10, 2048  ;;  %p2881_p13 = scmp.lt.s32.totalorder %s530_s10, %s530_s10 }
  0x70   : > { %p2874_p10 = scmp.ne.s32.totalorder %s530_s10, %s2873_s30  ;;  %p2882_p0 = scmp.lt.s32.totalorder %s2873_s30, %s2873_s30 }
  0x72   : > { %p2876_p11 = pnand %p2874_p10, %p3336_p7  ;;  %p2883_p2 = por %p2882_p0, %p2881_p13 }
  0x74   : > { %p2877_p12 = pneg %p2876_p11 }
  0x76   : > { %p2884_p4 = pnand %p2883_p2, %p2877_p12 }
  0x78   : > { %2887 = shalt.err (!%p2884_p4)
}
  0x79   : > { %2569 = dma.hbm_to_vmem [thread:$0]  (!%p3322_p5), %s3955_s13, 2048, %s530_s10, [#allocation13], %s3922_s0, %s3922_s0, %s3923_s2  }
  0x7a   : > { %s3956_s9 = sld [smem:[#allocation35_spill]] }
  0x80   : > { %s2888_s12 = scalar_lea.hbm %s3956_s9, 1024 }
  0x81   : > { %p2889_p1 = scmp.ne.s32.totalorder %s3956_s9, %s2888_s12  ;;  %p2895_p8 = scmp.lt.u32.totalorder %s2888_s12, %s3956_s9 }
  0x83   : > { %p2891_p3 = pnand %p2889_p1, %p3336_p7 }
  0x85   : > { %p2892_p6 = pneg %p2891_p3 }
  0x87   : > { %p2897_p9 = pnand %p2895_p8, %p2892_p6 }
  0x89   : > { %2900 = shalt.err (!%p2897_p9)
}
  0x8a   : > { %s2901_s10 = scalar_lea.vmem %s3381_s16, 1024  ;;  %p2909_p13 = scmp.lt.s32.totalorder %s3381_s16, %s3381_s16 }
  0x8b   : > { %p2902_p10 = scmp.ne.s32.totalorder %s3381_s16, %s2901_s10  ;;  %p2910_p0 = scmp.lt.s32.totalorder %s2901_s10, %s2901_s10 }
  0x8d   : > { %p2904_p11 = pnand %p2902_p10, %p3336_p7  ;;  %p2911_p2 = por %p2910_p0, %p2909_p13 }
  0x8f   : > { %p2905_p12 = pneg %p2904_p11 }
  0x91   : > { %p2912_p4 = pnand %p2911_p2, %p2905_p12 }
  0x93   : > { %2915 = shalt.err (!%p2912_p4)
}
  0x94   : > { %s3957_s30 = smov 4   ;;  %s3958_s5 = smov 64  }
  0x95   : > { %2566 = dma.hbm_to_vmem [thread:$0]  (!%p3322_p5), %s3956_s9, 1024, %s3381_s16, [#allocation10], %s3958_s5, %s3958_s5, %s3957_s30  }
  0x96   : > { %s3152_s3 = smov [#allocation14]   ;;  %s3959_s15 = sld [smem:[#allocation41_spill]] }
  0x97   : > { %s545_s12 = sshll.u32 %s3152_s3, 4  ;;  %s546_s12 = int_to_ptr.vmem [resolvable:$true] %s545_s12 }
  0x9c   : > { %s2916_s8 = scalar_lea.hbm %s3959_s15, 2048 }
  0x9d   : > { %p2917_p1 = scmp.ne.s32.totalorder %s3959_s15, %s2916_s8  ;;  %p2923_p8 = scmp.lt.u32.totalorder %s2916_s8, %s3959_s15 }
  0x9f   : > { %p2919_p3 = pnand %p2917_p1, %p3336_p7 }
  0xa1   : > { %p2920_p6 = pneg %p2919_p3 }
  0xa3   : > { %p2925_p9 = pnand %p2923_p8, %p2920_p6 }
  0xa5   : > { %2928 = shalt.err (!%p2925_p9)
}
  0xa6   : > { %s2929_s16 = scalar_lea.vmem %s546_s12, 2048  ;;  %p2937_p13 = scmp.lt.s32.totalorder %s546_s12, %s546_s12 }
  0xa7   : > { %p2930_p10 = scmp.ne.s32.totalorder %s546_s12, %s2929_s16  ;;  %p2938_p0 = scmp.lt.s32.totalorder %s2929_s16, %s2929_s16 }
  0xa9   : > { %p2932_p11 = pnand %p2930_p10, %p3336_p7  ;;  %p2939_p2 = por %p2938_p0, %p2937_p13 }
  0xab   : > { %p2933_p12 = pneg %p2932_p11 }
  0xad   : > { %p2940_p4 = pnand %p2939_p2, %p2933_p12 }
  0xaf   : > { %2943 = shalt.err (!%p2940_p4)
}
  0xb0   : > { %2572 = dma.hbm_to_vmem [thread:$0]  (!%p3322_p5), %s3959_s15, 2048, %s546_s12, [#allocation13], %s3958_s5, %s3958_s5, %s3957_s30  }
  0xb1   : > { %s2259_s17 = sadd.s32 4294967294, %s3142_s1   ;;  %s47_s22 = sadd.s32 1, %s3134_s18 }
  0xb2   : > { %s50_s4 = sadd.s32 1, %s3138_s19  ;;  %p48_p7 = scmp.ge.s32.totalorder %s47_s22, 2 }
  0xb3   : > { %s59_s6 = sadd.s32 1, %s3122_s29  ;;  %p66_p1 = scmp.ne.s32.totalorder %s3122_s29, %s3118_s28 }
  0xb4   : > { %p67_p3 = scmp.eq.s32.totalorder %s3142_s1, 0  ;;  %s4016_s22 = smov (%p48_p7, %s47_s22), 0 }
  0xb5   : > { %3960 = sst [smem:[#allocation24_spill]] %s4016_s22  ;;  %s4018_s4 = smov (!%p48_p7, %s50_s4), %s3138_s19 }
  0xb6   : > { %s55_s30 = ssub.s32 %s3134_s18, %s4016_s22  ;;  %p3466_p5 = por %p67_p3, %p66_p1 }
  0xb7   : > { %p52_p6 = scmp.ge.s32.totalorder %s4018_s4, 2  ;;  %p72_p8 = scmp.ne.s32.totalorder %s3118_s28, %s3114_s27 }
  0xb8   : > { %s85_s3 = sadd.s32 1, %s3110_s26  ;;  %p92_p9 = scmp.ne.s32.totalorder %s3110_s26, %s3106_s25 }
  0xb9   : > { %s4020_s4 = smov (%p52_p6, %s4018_s4), 0  ;;  %p3963_p10 = scmp.eq.s32.totalorder %s3309_s20, 0 }
  0xba   : > { %3962 = sst [smem:[#allocation25_spill]] %s4020_s4  ;;  %p3486_p12 = por %p92_p9, %p67_p3 }
  0xbb   : > { %p3482_p11 = por %p3963_p10, %p72_p8  ;;  %s54_s23 = ssub.s32 %s3138_s19, %s4020_s4 }
  0xbc   : > { %p98_p13 = scmp.ne.s32.totalorder %s3106_s25, %s3102_s24  ;;  %s56_s8 = sor.u32 %s55_s30, %s54_s23 }
  0xbd   : > { %s3964_s12 = scalar_select %p3482_p11, 1, 0 }
  0xbe   : > { %p83_p0 = scmp.eq.s32.totalorder %s54_s23, 0  ;;  %p57_p2 = scmp.eq.s32.totalorder %s56_s8, 0 }
  0xbf   : > { %p3966_p4 = pmov %p3963_p10  ;;  %p444_p3 = scmp.eq.s32.totalorder %s3309_s20, 3 }
  0xc0   : > { %s3501_s10 = scalar_select %p83_p0, %s3110_s26, %s85_s3  }
  0xc1   : > { %p3496_p7 = por %p98_p13, %p3966_p4  ;;  %p450_p6 = scmp.eq.s32.totalorder %s2259_s17, 3 }
  0xc2   : > { %s3504_s16 = scalar_select %p57_p2, %s3122_s29, %s59_s6  }
  0xc3   : > { %s3967_s14 = scalar_select %p3496_p7, 1, 0 }
  0xc4   : > { %p2589_p9 = scmp.lt.s32.totalorder %s3142_s1, 4  ;;  %s562_s24 = sand.u32 1, %s3122_s29  }
  0xc5   : > { %p3512_p10 = por %p444_p3, %p66_p1  ;;  %p3519_p13 = por %p450_p6, %p72_p8 }
  0xc6   : > { %s2267_s30 = sshll.u32 %s562_s24, 3  ;;  %s2268_s6 = sshll.u32 %s3138_s19, 1 }
  0xc7   : > { %s3968_s0 = scalar_select %p3512_p10, 1, 0 }
  0xc8   : > { %s3969_s2 = scalar_select %p3519_p13, 1, 0 }
  0xc9   : > { %s571_s3 = sadd.s32 %s3134_s18, %s2268_s6  ;;  %s566_s23 = scalar_lea.vmem [#allocation3], %s2267_s30 }
  0xca   : > { %s575_s8 = sshll.u32 %s566_s23, 4  ;;  %s2269_s7 = sshll.u32 %s571_s3, 7  ;;  %s3525_s8 = int_to_ptr.vmem [resolvable:$true] %s575_s8 }
  0xcb   : > { %s3970_s13 = sld [smem:[#allocation26_spill]]  ;;  %p3536_p1 = pnand %p2589_p9, %p3466_p5 }
  0xcc   : > { %p3544_p8 = pnand %p2589_p9, %p3486_p12  ;;  %s563_s9 = scalar_lea.sflag [#allocation4], %s562_s24 }
  0xcd   : > { %p2946_p2 = pneg %p3536_p1 }
  0xd1   : > { %s3530_s15 = scalar_lea.hbm %s3970_s13, %s2269_s7  ;;  %s2949_s11 = scalar_lea.hbm %s3970_s13, 512 }
  0xd2   : > { %s2944_s5 = scalar_lea.hbm %s3530_s15, 128  ;;  %p2950_p12 = scmp.lt.u32.totalorder %s3530_s15, %s3970_s13 }
  0xd3   : > { %p2945_p0 = scmp.ne.s32.totalorder %s3530_s15, %s2944_s5  ;;  %p2951_p3 = scmp.lt.u32.totalorder %s2949_s11, %s2944_s5 }
  0xd4   : > { %p2953_p9 = scmp.lt.u32.totalorder %s2944_s5, %s3530_s15 }
  0xd5   : > { %p2947_p5 = pnand %p2946_p2, %p2945_p0  ;;  %p2952_p6 = por %p2951_p3, %p2950_p12 }
  0xd7   : > { %p2948_p4 = pneg %p2947_p5  ;;  %p2954_p13 = por %p2953_p9, %p2952_p6 }
  0xd9   : > { %p2955_p10 = pnand %p2954_p13, %p2948_p4 }
  0xdb   : > { %2958 = shalt.err (!%p2955_p10)
}
  0xdc   : > { %s2959_s24 = scalar_lea.vmem %s3525_s8, 128  ;;  %s3153_s6 = smov [#allocation3]  }
  0xdd   : > { %p2960_p0 = scmp.ne.s32.totalorder %s3525_s8, %s2959_s24  ;;  %s2964_s3 = sshll.u32 %s3153_s6, 4  ;;  %s2965_s3 = int_to_ptr.vmem [resolvable:$false] %s2964_s3 }
  0xde   : > { %s2966_s23 = scalar_lea.vmem %s2965_s3, 256  ;;  %p2967_p11 = scmp.lt.s32.totalorder %s3525_s8, %s2965_s3 }
  0xdf   : > { %p2962_p5 = pnand %p2960_p0, %p2946_p2  ;;  %p2968_p12 = scmp.lt.s32.totalorder %s2966_s23, %s2959_s24 }
  0xe1   : > { %p2963_p7 = pneg %p2962_p5  ;;  %p2969_p3 = por %p2968_p12, %p2967_p11 }
  0xe3   : > { %p2970_p6 = pnand %p2969_p3, %p2963_p7 }
  0xe5   : > { %2973 = shalt.err (!%p2970_p6)
}
  0xe6   : > { %2576 = dma.hbm_to_vmem [thread:$0]  (!%p3536_p1), %s3530_s15, 128, %s3525_s8, %s563_s9  }
  0xe7   : > { %s584_s5 = sand.u32 1, %s3110_s26   ;;  %s2371_s17 = sshll.u32 %s3138_s19, 8 }
  0xe8   : > { %s2270_s11 = sshll.u32 %s584_s5, 4  ;;  %s3973_s3 = sld [smem:[#allocation27_spill]] }
  0xe9   : > { %s586_s4 = scalar_lea.vmem [#allocation6], %s2270_s11  ;;  %s3974_s13 = sand.u32 1, %s3142_s1  }
  0xea   : > { %s593_s23 = sshll.u32 %s586_s4, 4  ;;  %s3585_s22 = scalar_lea.sflag [#allocation7], %s3974_s13  ;;  %s3581_s23 = int_to_ptr.vmem [resolvable:$true] %s593_s23 }
  0xeb   : > { %p2976_p7 = pneg %p3544_p8 }
  0xee   : > { %s3579_s24 = scalar_lea.hbm %s3973_s3, %s2371_s17  ;;  %s2979_s9 = scalar_lea.hbm %s3973_s3, 512 }
  0xef   : > { %s2974_s15 = scalar_lea.hbm %s3579_s24, 256  ;;  %p2980_p1 = scmp.lt.u32.totalorder %s3579_s24, %s3973_s3 }
  0xf0   : > { %p2975_p11 = scmp.ne.s32.totalorder %s3579_s24, %s2974_s15  ;;  %p2981_p2 = scmp.lt.u32.totalorder %s2979_s9, %s2974_s15 }
  0xf1   : > { %p2983_p9 = scmp.lt.u32.totalorder %s2974_s15, %s3579_s24 }
  0xf2   : > { %p2977_p10 = pnand %p2976_p7, %p2975_p11  ;;  %p2982_p4 = por %p2981_p2, %p2980_p1 }
  0xf4   : > { %p2978_p13 = pneg %p2977_p10  ;;  %p2984_p0 = por %p2983_p9, %p2982_p4 }
  0xf6   : > { %p2985_p5 = pnand %p2984_p0, %p2978_p13 }
  0xf8   : > { %2988 = shalt.err (!%p2985_p5)
}
  0xf9   : > { %s2989_s13 = scalar_lea.vmem %s3581_s23, 256  ;;  %s3154_s17 = smov [#allocation6]  }
  0xfa   : > { %p2990_p12 = scmp.ne.s32.totalorder %s3581_s23, %s2989_s13  ;;  %s2994_s6 = sshll.u32 %s3154_s17, 4  ;;  %s2995_s6 = int_to_ptr.vmem [resolvable:$false] %s2994_s6 }
  0xfb   : > { %s2996_s4 = scalar_lea.vmem %s2995_s6, 512  ;;  %p2997_p11 = scmp.lt.s32.totalorder %s3581_s23, %s2995_s6 }
  0xfc   : > { %p2992_p3 = pnand %p2990_p12, %p2976_p7  ;;  %p2998_p10 = scmp.lt.s32.totalorder %s2996_s4, %s2989_s13 }
  0xfe   : > { %p2993_p6 = pneg %p2992_p3  ;;  %p2999_p1 = por %p2998_p10, %p2997_p11 }
 0x100   : > { %p3000_p2 = pnand %p2999_p1, %p2993_p6 }
 0x102   : > { %3003 = shalt.err (!%p3000_p2)
}
 0x103   : > { %s3975_s15 = smov 8   ;;  %s3976_s8 = smov 128  }
 0x104   : > { %2579 = dma.hbm_to_vmem [thread:$0]  (!%p3544_p8), %s3579_s24, 256, %s3581_s23, %s3585_s22, %s3976_s8, %s3976_s8, %s3975_s15  }
 0x105   : > { %p3977_p7 = scmp.ne.s32.totalorder %s3950_s21, 0 }
 0x106   : > { %s3619_s7 = sand.u32 (!%p3977_p7), 1, %s3118_s28   ;;  %p3978_p13 = scmp.ne.s32.totalorder (!%p3977_p7), %s3964_s12, 0 }
 0x107   : > { %611 = sbr.rel (%p3977_p7) target bundleno = 4659 (0x1233), region = 88  ;;  %s2274_s9 = sshll.u32 (!%p3977_p7), %s3619_s7, 3 }
 0x108   : > { %s614_s5 = scalar_lea.sflag (!%p3977_p7), [#allocation4], %s3619_s7  ;;  %s617_s11 = scalar_lea.vmem (!%p3977_p7), [#allocation3], %s2274_s9 }
 0x10e   : > { %3077 = dma.done.wait (%p3978_p13), %s614_s5, 128  }
 0x10f   : > { %3079 = vsyncadd (%p3978_p13), %s614_s5, 4294967168  ;;  %s622_s22 = sand.u32 1, %s3309_s20   ;;  %s624_s21 = sand.u32 1, %s3106_s25  }
 0x110   : > { %s3629_s30 = sshll.u32 %s624_s21, 4  ;;  %s623_s24 = scalar_lea.sflag [#allocation7], %s622_s22 }
 0x111   : > { %s626_s23 = scalar_lea.vmem [#allocation6], %s3629_s30  ;;  %p3979_p8 = scmp.ne.s32.totalorder %s3967_s14, 0 }
 0x113   : > { %3081 = dma.done.wait (%p3979_p8), %s623_s24, 256  }
 0x114   : > { %3083 = vsyncadd (%p3979_p8), %s623_s24, 4294967040  ;;  %p3980_p4 = scmp.eq.s32.totalorder %s3309_s20, 0 }
 0x116   : > { %3085 = dma.done.wait (%p3980_p4), [#allocation7], 1024   ;;  %p3981_p9 = pmov %p3980_p4 }
 0x117   : > { %p3982_p0 = pmov %p3980_p4 }
 0x118   : > { %3087 = vsyncadd (%p3981_p9), [#allocation7], 4294966272 }
 0x119   : > { %3089 = dma.done.wait (%p3982_p0), [#allocation10], 3072   ;;  %p3983_p5 = pmov %p3982_p0 }
 0x11a   : > { %p3984_p12 = pmov %p3982_p0 }
 0x11b   : > { %3091 = vsyncadd (%p3983_p5), [#allocation10], 4294964224 }
 0x11c   : > { %3093 = dma.done.wait (%p3984_p12), [#allocation13], 4096   ;;  %p3985_p3 = pmov %p3982_p0 }
 0x11d   : > { %s3986_s12 = sld [smem:[#allocation23_spill]]  ;;  %s3987_s17 = sld [smem:[#allocation28_spill]]  ;;  %v3653_v0 = vld [vmem:[%s617_s11] sm:$0xff] }
 0x11e   : > { %3095 = vsyncadd (%p3985_p3), [#allocation13], 4294963200  ;;  %s3657_s4 = scalar_lea.vmem [#allocation15], %s2274_s9  ;;  %s3988_s15 = sld [smem:[#allocation22_spill]] }
 0x123   : > { %p705_p6 = scmp.lt.s32.totalorder %s3986_s12, 1 }
 0x124   : > { %p2282_p11 = scmp.ne.s32.totalorder %s3988_s15, 0 }
 0x125   : > { %s4022_s12 = smov (!%p705_p6, %s3986_s12), 1  ;;  %v2700_v2 = vld [vmem:[#allocation9 + $0x4] ss:$8 sps:$4 sm:$0xff] (!%p2282_p11)   ;;  %v2702_v3 = vld [vmem:[#allocation9] ss:$8 sps:$4 sm:$0xff] (!%p2282_p11)   ;;  %v3155_v4 = vmov (!%p2282_p11), 0   ;;  %v736_v22 = vlaneseq (!%p2282_p11) }
 0x126   : > { %s707_s6 = scalar_lea.vmem %s3987_s17, %s4022_s12  ;;  %714 = sbr.rel (%p2282_p11) target bundleno = 546 (0x222), region = 120  ;;  %858 = vmatprep.mubr.bf16.mxu0 (!%p2282_p11), %v3155_v4  ;;  %826 = vmatprep.subr.bf16.mxu0 (!%p2282_p11), %v2700_v2  ;;  %v2703_v5 = vld [vmem:[#allocation9 + $0x14] ss:$8 sps:$4 sm:$0xff] (!%p2282_p11)   ;;  %v2705_v6 = vld [vmem:[#allocation9 + $0x10] ss:$8 sps:$4 sm:$0xff] (!%p2282_p11)  }
 0x127   : > { %v3655_v1 = vld [vmem:[%s707_s6] sm:$0x1]  ;;  %827 = vmatpush1.bf16.msra.mxu0 (!%p2282_p11), %v2702_v3  ;;  %v2706_v7 = vld [vmem:[#allocation9 + $0x24] ss:$8 sps:$4 sm:$0xff] (!%p2282_p11)   ;;  %v2709_v9 = vld [vmem:[#allocation9 + $0x34] ss:$8 sps:$4 sm:$0xff] (!%p2282_p11)  }
 0x128   : > { %828 = vmatprep.subr.bf16.mxu0 (!%p2282_p11), %v2703_v5  ;;  %v2708_v8 = vld [vmem:[#allocation9 + $0x20] ss:$8 sps:$4 sm:$0xff] (!%p2282_p11)   ;;  %v2711_v10 = vld [vmem:[#allocation9 + $0x30] ss:$8 sps:$4 sm:$0xff] (!%p2282_p11)   ;;  %v2712_v11 = vld [vmem:[#allocation9 + $0x44] ss:$8 sps:$4 sm:$0xff] (!%p2282_p11)  }
 0x129   : > { %v2714_v12 = vld [vmem:[#allocation9 + $0x40] ss:$8 sps:$4 sm:$0xff] (!%p2282_p11)   ;;  %v2715_v13 = vld [vmem:[#allocation9 + $0x54] ss:$8 sps:$4 sm:$0xff] (!%p2282_p11)   ;;  %v2717_v14 = vld [vmem:[#allocation9 + $0x50] ss:$8 sps:$4 sm:$0xff] (!%p2282_p11)  }
 0x12a   : > { %v2718_v15 = vld [vmem:[#allocation9 + $0x64] ss:$8 sps:$4 sm:$0xff] (!%p2282_p11)   ;;  %v2720_v16 = vld [vmem:[#allocation9 + $0x60] ss:$8 sps:$4 sm:$0xff] (!%p2282_p11)   ;;  %v2721_v17 = vld [vmem:[#allocation9 + $0x74] ss:$8 sps:$4 sm:$0xff] (!%p2282_p11)  }
 0x12b   : > { %829 = vmatpush1.bf16.msra.mxu0 (!%p2282_p11), %v2705_v6  ;;  %v2723_v18 = vld [vmem:[#allocation9 + $0x70] ss:$8 sps:$4 sm:$0xff] (!%p2282_p11)   ;;  %v737_v23 = vshrl.u32 (!%p2282_p11), %v736_v22, 7  ;;  %s3989_s9 = sld [smem:[#allocation34_spill]] (!%p2282_p11) }
 0x12c   : > { %830 = vmatprep.subr.bf16.mxu0 (!%p2282_p11), %v2706_v7  ;;  %v715_v19 = vld [vmem:[%s626_s23] sm:$0xff] (!%p2282_p11)  ;;  %v716_v20 = vld [vmem:[%s626_s23 + $0x8] sm:$0xff] (!%p2282_p11) }
 0x12d   : > { %v717_v21 = vpack.c.bf16 %v716_v20, %v715_v19  ;;  %v738_v24 = vsub.s32 0, %v737_v23  ;;  %v742_v26 = vsub.s32 1, %v737_v23 }
 0x12f   : > { %831 = vmatpush1.bf16.msra.mxu0 %v2708_v8 }
 0x130   : > { %832 = vmatprep.subr.bf16.mxu0 %v2709_v9 }
 0x131   : > { %v734_v25 = vld [vmem:[%s3989_s9] sm:$0x3] }
 0x132   : > { %v739_v27 = vrot.slane %v734_v25, %v738_v24  ;;  %v743_v29 = vrot.slane %v734_v25, %v742_v26 }
 0x133   : > { %833 = vmatpush1.bf16.msra.mxu0 %v2711_v10 }
 0x134   : > { %834 = vmatprep.subr.bf16.mxu0 %v2712_v11 }
 0x137   : > { %835 = vmatpush1.bf16.msra.mxu0 %v2714_v12 }
 0x138   : > { %836 = vmatprep.subr.bf16.mxu0 %v2715_v13 }
 0x13b   : > { %837 = vmatpush1.bf16.msra.mxu0 %v2717_v14 }
 0x13c   : > { %838 = vmatprep.subr.bf16.mxu0 %v2718_v15 }
 0x13f   : > { %839 = vmatpush1.bf16.msra.mxu0 %v2720_v16 }
 0x140   : > { %840 = vmatprep.subr.bf16.mxu0 %v2721_v17 }
 0x143   : > { %841 = vmatpush1.bf16.msra.mxu0 %v2723_v18 }
 0x146   : > { %859 = vmatmul.mubr.bf16.vlgmr.msra.gmra.mrb[0].mxu0 %v717_v21 }
 0x219   : > { %v860_v28 = vpop.f32.mrb[0].mxu0 }
 0x21a   : > { %v862_v30 = vpop.f32.mrb[1].mxu0  ;;  %v861_v32 = vadd.f32 %v860_v28, %v739_v27 }
 0x21b   : > { %v864_v31 = vpop.f32.mrb[2].mxu0  ;;  %v863_v35 = vadd.f32 %v862_v30, %v743_v29 }
 0x21c   : > { %v865_v33 = vadd.f32 %v864_v31, %v739_v27  ;;  %v866_v34 = vpop.f32.mrb[3].mxu0 }
 0x21d   : > { %v867_v36 = vadd.f32 %v866_v34, %v743_v29 }
 0x21e   : > { %v869_v37 = vpack.c.bf16 %v865_v33, %v861_v32 }
 0x21f   : > { %v870_v38 = vpack.c.bf16 %v867_v36, %v863_v35 }
 0x220   : > { %871 = vst [vmem:[#allocation2] sm:$0xff] %v869_v37 }
 0x221   : > { %872 = vst [vmem:[#allocation2 + $0x8] sm:$0xff] %v870_v38 }
 0x222 PF: > { %875 = vadd.xlane.f32.xlu0 %v3653_v0  ;;  %v2724_v43 = vld [vmem:[#allocation8] sm:$0xff]   ;;  %v3156_v44 = vmov 0.0   ;;  %v2725_v45 = vld [vmem:[#allocation8 + $0x8] sm:$0xff]   ;;  %v2726_v46 = vld [vmem:[#allocation8 + $0x10] sm:$0xff]   ;;  %vm3157_vm0 = vmmov 0   ;;  %s3990_s22 = sld [smem:[#allocation29_spill]]  ;;  %v1043_v15 = vlaneseq }
 0x223   : > { %2431 = vmatprep.subr.bf16.mxu0 %v3156_v44  ;;  %2451 = vmatprep.subr.bf16.mxu1 %v3156_v44  ;;  %v2727_v47 = vld [vmem:[#allocation8 + $0x18] sm:$0xff]   ;;  %v2728_v48 = vld [vmem:[#allocation8 + $0x20] sm:$0xff]   ;;  %v2729_v49 = vld [vmem:[#allocation8 + $0x28] sm:$0xff]   ;;  %s3991_s24 = sld [smem:[#allocation30_spill]]  ;;  %vm1048_vm3 = vcmask 261120   ;;  %s3992_s14 = sld [smem:[#allocation32_spill]] }
 0x224   : > { %2432 = vmatpush3.bf16.msra.mxu0 %v2724_v43  ;;  %2447 = vmatprep.mubr.msk.bf16.mxu0 %vm3157_vm0, %v3156_v44  ;;  %v2730_v50 = vld [vmem:[#allocation8 + $0x30] sm:$0xff]   ;;  %v2731_v51 = vld [vmem:[#allocation8 + $0x38] sm:$0xff]   ;;  %v3705_v16 = vshrl.u32 %v1043_v15, 7  ;;  %vm1040_vm4 = vcmp.eq.f32.partialorder %v3655_v1, 0.0  ;;  %vm1095_vm5 = vcmask 130048   ;;  %s3158_s13 = smov 96  }
 0x225   : > { %2433 = vmatprep.subr.bf16.mxu0 %v3156_v44  ;;  %2453 = vmatprep.mubr.msk.bf16.mxu1 %vm3157_vm0, %v3156_v44  ;;  %v1041_v18 = vsel %vm1040_vm4, -1e+09, %v3156_v44  ;;  %s3159_s17 = smov 64   ;;  %s3160_s6 = smov 32  }
 0x226   : > { %v1045_v17 = vsub.s32 0, %v3705_v16  ;;  %s3993_s8 = sld [smem:[#allocation36_spill]]  ;;  %s3994_s11 = sld [smem:[#allocation37_spill]] }
 0x227   : > { %v3691_v5 = vld [vmem:[#allocation2] sm:$0xff]  ;;  %s3995_s30 = sld [smem:[#allocation38_spill]]  ;;  %s3996_s12 = sld [smem:[#allocation40_spill]] }
 0x228   : > { %2434 = vmatpush3.bf16.msra.mxu0 %v2725_v45  ;;  %v2299_v60 = vld [vmem:[%s3990_s22] ss:$0 sm:$0xff]  ;;  %v1053_v6 = vsel %vm1048_vm3, %v3691_v5, 0  ;;  %v3712_v19 = vrot.slane %v1041_v18, %v1045_v17  ;;  %v3721_v30 = vld [vmem:[#allocation2 + $0x8] sm:$0xff]  ;;  %s2094_s5 = sshll.u32 %s3657_s4, 4  ;;  %s4000_s21 = sld [smem:[#allocation43_spill]]  ;;  %s3832_s5 = int_to_ptr.vmem [resolvable:$true] %s2094_s5 }
 0x229   : > { %2435 = vmatprep.subr.bf16.mxu0 %v3156_v44  ;;  %v2300_v63 = vld [vmem:[%s3991_s24] ss:$0 sm:$0xff]  ;;  %2452 = vmatpush3.bf16.xpose.msra.mxu1 %v1053_v6  ;;  %s2079_s24 = scalar_lea.sflag [#allocation5], %s3619_s7  ;;  %s3004_s23 = scalar_lea.vmem %s3832_s5, 128 }
 0x22a   : > { %2457 = vmatprep.subr.bf16.mxu1 %v3156_v44  ;;  %v2301_v7 = vld [vmem:[%s3992_s14] ss:$0 sm:$0xff]  ;;  %s3997_s14 = sld [smem:[#allocation23_spill]]  ;;  %p3005_p10 = scmp.ne.s32.totalorder %s3832_s5, %s3004_s23 }
 0x22b   : > { %p4001_p1 = scmp.ne.s32.totalorder %s3968_s0, 0 }
 0x22c   : > { %2436 = vmatpush3.bf16.msra.mxu0 %v2726_v46 }
 0x22d   : > { %2437 = vmatprep.subr.bf16.mxu0 %v3156_v44  ;;  %p3006_p2 = pnand %p3005_p10, %p4001_p1 }
 0x22f   : > { %p3007_p7 = pneg %p3006_p2 }
 0x230   : > { %2438 = vmatpush3.bf16.msra.mxu0 %v2727_v47 }
 0x231   : > { %2439 = vmatprep.subr.bf16.mxu0 %v3156_v44 }
 0x234   : > { %2440 = vmatpush3.bf16.msra.mxu0 %v2728_v48 }
 0x235   : > { %2441 = vmatprep.subr.bf16.mxu0 %v3156_v44 }
 0x238   : > { %2442 = vmatpush3.bf16.msra.mxu0 %v2729_v49 }
 0x239   : > { %2443 = vmatprep.subr.bf16.mxu0 %v3156_v44 }
 0x23c   : > { %2444 = vmatpush3.bf16.msra.mxu0 %v2730_v50 }
 0x23d   : > { %2445 = vmatprep.subr.bf16.mxu0 %v3156_v44 }
 0x240   : > { %2446 = vmatpush3.bf16.msra.mxu0 %v2731_v51 }
 0x241   : > { %2475 = vmatprep.subr.bf16.mxu0 %v3156_v44 }
 0x2af   : > { %v876_v39 = vpop.xlane.xlu0 %875 }
 0x2b0   : > { %v878_v40 = vmul.f32 0.0078125, %v876_v39 }
 0x2b2   : > { %v879_v41 = vsub.f32 %v3653_v0, %v878_v40 }
 0x2b4   : > { %v880_v42 = vmul.f32 %v879_v41, %v879_v41  ;;  %v899_v61 = vmul.f32 %v2299_v60, %v879_v41  ;;  %v2732_v60 = vld [vmem:[#allocation11] sm:$0xff]  }
 0x2b6   : > { %881 = vadd.xlane.f32.xlu0 %v880_v42 }
 0x2cc   : > { %1156 = vrot.lane.b32.xlu0 %v3691_v5, %s3158_s13 }
 0x343   : > { %v882_v52 = vpop.xlane.xlu0 %881 }
 0x344   : > { %v883_v53 = vmul.f32 0.007874016, %v882_v52 }
 0x346   : > { %2780 = vrsqrt.f32 %v883_v53  ;;  %vm886_vm1 = vcmp.eq.f32.partialorder %v883_v53, inf  ;;  %v889_v56 = vand.u32 2147483648, %v883_v53  ;;  %vm888_vm2 = vcmp.eq.f32.partialorder %v883_v53, 0.0 }
 0x347   : > { %v1157_v33 = vpop.permute.xlu0 %1156 }
 0x348   : > { %v1162_v35 = vsel %vm1048_vm3, %v1157_v33, 0 }
 0x350   : > { %v2781_v54 = vpop.eup %2780 }
 0x351   : > { %v885_v55 = vmul.f32 %v2781_v54, %v883_v53  ;;  %v2734_v54 = vld [vmem:[#allocation11 + $0x10] sm:$0xff]  }
 0x353   : > { %v887_v57 = vsel %vm886_vm1, %v883_v53, %v885_v55  ;;  %v2735_v55 = vld [vmem:[#allocation11 + $0x18] sm:$0xff]  }
 0x354   : > { %v890_v58 = vsel %vm888_vm2, %v889_v56, %v887_v57 }
 0x355   : > { %v891_v59 = vadd.f32 1e-06, %v890_v58 }
 0x357   : > { %2782 = vrcp.f32 %v891_v59 }
 0x361   : > { %v2783_v62 = vpop.eup %2782 }
 0x362   : > { %v900_v2 = vmul.f32 %v2783_v62, %v899_v61  ;;  %v2733_v62 = vld [vmem:[#allocation11 + $0x8] sm:$0xff]  }
 0x364   : > { %v907_v3 = vadd.f32 %v2300_v63, %v900_v2 }
 0x366   : > { %v908_v4 = vpack.c.bf16 %v907_v3, %v907_v3 }
 0x368   : > { %2448 = vmatmul.mubr.bf16.vlgmr.msra.gmra.mrb[0].mxu0 %v908_v4 }
 0x369   : > { %2479 = vmatprep.mubr.msk.bf16.mxu0 %vm3157_vm0, %v3156_v44  ;;  %2476 = vmatpush3.bf16.msra.mxu0 %v2734_v54 }
 0x36a   : > { %2477 = vmatprep.subr.bf16.mxu0 %v3156_v44 }
 0x36d   : > { %2478 = vmatpush3.bf16.msra.mxu0 %v2735_v55 }
 0x36e   : > { %2491 = vmatprep.subr.bf16.mxu0 %v3156_v44 }
 0x43b   : > { %v1014_v8 = vpop.f32.mrb[0].mxu0 }
 0x43c   : > { %v1015_v9 = vadd.f32 %v2301_v7, %v1014_v8  ;;  %v2449_v10 = vpop.f32.mrb[1].mxu0 }
 0x43d   : > { %v1017_v11 = vpop.f32.mrb[2].mxu0 }
 0x43e   : > { %v1020_v12 = vmul.f32 0.17677669, %v1015_v9  ;;  %v2450_v13 = vpop.f32.mrb[3].mxu0 }
 0x440   : > { %v3699_v14 = vpack.c.bf16 %v1020_v12, %v1020_v12 }
 0x442   : > { %2454 = vmatmul.mubr.msk.bf16.vlgmr.msra.gmra.mrb[0].mxu1 %vm1048_vm3, %v3699_v14 }
 0x443   : > { %2459 = vmatprep.mubr.msk.bf16.mxu1 %vm3157_vm0, %v3156_v44  ;;  %2458 = vmatpush3.bf16.msra.mxu1 %v3721_v30 }
 0x444   : > { %2463 = vmatprep.subr.bf16.mxu1 %v3156_v44 }
 0x515   : > { %v1089_v20 = vpop.f32.mrb[0].mxu1 }
 0x516   : > { %v1090_v21 = vadd.f32 %v1089_v20, %v3712_v19  ;;  %v2455_v22 = vpop.f32.mrb[1].mxu1 }
 0x517   : > { %v1092_v23 = vpop.f32.mrb[2].mxu1 }
 0x518   : > { %v2456_v24 = vpop.f32.mrb[3].mxu1  ;;  %v1096_v25 = vsel %vm1095_vm5, %v1090_v21, -inf }
 0x519   : > { %1097 = vmax.xlane.f32.xlu1 %v1096_v25 }
 0x5a6   : > { %v1098_v1 = vpop.xlane.xlu1 %1097 }
 0x5a7   : > { %v1099_v26 = vsub.f32 %v1090_v21, %v1098_v1 }
 0x5a9   : > { %v1100_v27 = vmul.f32 1.442695, %v1099_v26 }
 0x5ab   : > { %2784 = vpow2.f32 %v1100_v27 }
 0x5b5   : > { %v2785_v28 = vpop.eup %2784 }
 0x5b6   : > { %v1102_v29 = vsel %vm1095_vm5, %v2785_v28, 0.0 }
 0x5b7   : > { %1103 = vadd.xlane.f32.xlu1 %v1102_v29 }
 0x5c8   : > { %1153 = vrot.lane.b32.xlu1 %v3699_v14, %s3158_s13 }
 0x644   : > { %v1104_v31 = vpop.xlane.xlu1 %1103 }
 0x645   : > { %2786 = vrcp.f32 %v1104_v31 }
 0x648   : > { %v1154_v37 = vpop.permute.xlu1 %1153 }
 0x64f   : > { %v2787_v32 = vpop.eup %2786 }
 0x650   : > { %v1106_v34 = vmul.f32 %v2787_v32, %v2785_v28 }
 0x652   : > { %v1107_v36 = vpack.c.bf16 %v1106_v34, %v1106_v34 }
 0x654   : > { %2460 = vmatmul.mubr.msk.bf16.vlgmr.msra.gmra.mrb[4].mxu1 %vm1095_vm5, %v1107_v36 }
 0x655   : > { %2464 = vmatpush3.bf16.xpose.msra.mxu1 %v1162_v35  ;;  %2465 = vmatprep.mubr.msk.bf16.mxu1 %vm3157_vm0, %v3156_v44  ;;  %v2736_v35 = vld [vmem:[#allocation11 + $0x20] sm:$0xff]  }
 0x656   : > { %2469 = vmatprep.subr.bf16.mxu1 %v3156_v44 }
 0x65c   : > { %2466 = vmatmul.mubr.msk.bf16.vlgmr.msra.gmra.mrb[8].mxu1 %vm1048_vm3, %v1154_v37 }
 0x65d   : > { %2471 = vmatprep.mubr.msk.bf16.mxu1 %vm3157_vm0, %v3156_v44 }
 0x727   : > { %v1145_v38 = vpop.f32.mrb[4].mxu1 }
 0x728   : > { %v2461_v39 = vpop.f32.mrb[5].mxu1  ;;  %v1151_v63 = vpack.c.bf16 %v1145_v38, %v1145_v38 }
 0x729   : > { %v1148_v40 = vpop.f32.mrb[6].mxu1 }
 0x72a   : > { %v2462_v41 = vpop.f32.mrb[7].mxu1 }
 0x72f   : > { %v1198_v42 = vpop.f32.mrb[8].mxu1 }
 0x730   : > { %v1199_v43 = vadd.f32 %v1198_v42, %v3712_v19  ;;  %v2467_v45 = vpop.f32.mrb[9].mxu1  ;;  %v2737_v42 = vld [vmem:[#allocation11 + $0x28] sm:$0xff]  }
 0x731   : > { %v1201_v46 = vpop.f32.mrb[10].mxu1 }
 0x732   : > { %v2468_v47 = vpop.f32.mrb[11].mxu1  ;;  %v1204_v48 = vsel %vm1095_vm5, %v1199_v43, -inf }
 0x733   : > { %1205 = vmax.xlane.f32.xlu1 %v1204_v48 }
 0x744   : > { %1376 = vrot.lane.b32.xlu1 %v3691_v5, %s3159_s17 }
 0x748   : > { %1374 = vrot.lane.b32.xlu1 %v3699_v14, %s3159_s17 }
 0x7c0   : > { %v1206_v49 = vpop.xlane.xlu1 %1205 }
 0x7c1   : > { %v1207_v50 = vsub.f32 %v1199_v43, %v1206_v49 }
 0x7c3   : > { %v1208_v51 = vmul.f32 1.442695, %v1207_v50 }
 0x7c4   : > { %v1377_v2 = vpop.permute.xlu1 %1376 }
 0x7c5   : > { %2788 = vpow2.f32 %v1208_v51  ;;  %v1382_v4 = vsel %vm1048_vm3, %v1377_v2, 0 }
 0x7c8   : > { %v1375_v12 = vpop.permute.xlu1 %1374 }
 0x7cf   : > { %v2789_v52 = vpop.eup %2788 }
 0x7d0   : > { %v1210_v53 = vsel %vm1095_vm5, %v2789_v52, 0.0 }
 0x7d1   : > { %1211 = vadd.xlane.f32.xlu0 %v1210_v53 }
 0x7e7   : > { %1217 = vrot.lane.b32.xlu0 %v3721_v30, %s3158_s13  ;;  %s3998_s13 = sld [smem:[#allocation22_spill]] }
 0x85e   : > { %v1212_v56 = vpop.xlane.xlu0 %1211 }
 0x85f   : > { %2790 = vrcp.f32 %v1212_v56 }
 0x862   : > { %v1218_v57 = vpop.permute.xlu0 %1217 }
 0x863   : > { %2470 = vmatpush3.bf16.msra.mxu1 %v1218_v57 }
 0x864   : > { %2483 = vmatprep.subr.bf16.mxu1 %v3156_v44 }
 0x869   : > { %v2791_v58 = vpop.eup %2790 }
 0x86a   : > { %v1214_v59 = vmul.f32 %v2791_v58, %v2789_v52 }
 0x86c   : > { %v1215_v61 = vpack.c.bf16 %v1214_v59, %v1214_v59 }
 0x86e   : > { %2472 = vmatmul.mubr.msk.bf16.vlgmr.msra.gmra.mrb[12].mxu1 %vm1095_vm5, %v1215_v61  ;;  %v2739_v61 = vld [vmem:[#allocation11 + $0x38] sm:$0xff]  }
 0x86f   : > { %2484 = vmatpush3.bf16.msra.mxu1 %v2732_v60  ;;  %2487 = vmatprep.mubr.msk.bf16.mxu1 %vm3157_vm0, %v3156_v44 }
 0x870   : > { %2485 = vmatprep.subr.bf16.mxu1 %v3156_v44 }
 0x873   : > { %2486 = vmatpush3.bf16.msra.mxu1 %v2733_v62 }
 0x874   : > { %2497 = vmatprep.subr.bf16.mxu1 %v3156_v44 }
 0x876   : > { %2488 = vmatmul.mubr.msk.bf16.vlgmr.msra.gmra.mrb[16].mxu1 %vm1048_vm3, %v1151_v63 }
 0x877   : > { %2499 = vmatprep.mubr.msk.bf16.mxu1 %vm3157_vm0, %v3156_v44 }
 0x941   : > { %v1257_v3 = vpop.f32.mrb[12].mxu1 }
 0x942   : > { %v1263_v6 = vpack.c.bf16 %v1257_v3, %v1257_v3  ;;  %v2473_v7 = vpop.f32.mrb[13].mxu1 }
 0x943   : > { %v1260_v8 = vpop.f32.mrb[14].mxu1 }
 0x944   : > { %v2474_v9 = vpop.f32.mrb[15].mxu1  ;;  %2480 = vmatmul.mubr.msk.bf16.vlgmr.msra.gmra.mrb[4].mxu0 %vm1048_vm3, %v1263_v6 }
 0x945   : > { %2492 = vmatpush3.bf16.xpose.msra.mxu0 %v1382_v4  ;;  %2493 = vmatprep.mubr.msk.bf16.mxu0 %vm3157_vm0, %v3156_v44 }
 0x946   : > { %2503 = vmatprep.subr.bf16.mxu0 %v3156_v44 }
 0x949   : > { %v1368_v10 = vpop.f32.mrb[16].mxu1 }
 0x94a   : > { %v2489_v11 = vpop.f32.mrb[17].mxu1 }
 0x94b   : > { %v1371_v13 = vpop.f32.mrb[18].mxu1 }
 0x94c   : > { %v2490_v15 = vpop.f32.mrb[19].mxu1  ;;  %2494 = vmatmul.mubr.msk.bf16.vlgmr.msra.gmra.mrb[8].mxu0 %vm1048_vm3, %v1375_v12 }
 0x94d   : > { %2507 = vmatprep.mubr.msk.bf16.mxu0 %vm3157_vm0, %v3156_v44  ;;  %2504 = vmatpush3.bf16.msra.mxu0 %v2736_v35  ;;  %v2330_v15 = vld [vmem:[%s3993_s8] ss:$0 sm:$0xff]  ;;  %v2749_v35 = vld [vmem:[#allocation12 + $0x30] ss:$8 sps:$4 sm:$0xff]   ;;  %s3999_s8 = sld [smem:[#allocation42_spill]] }
 0x94e   : > { %2505 = vmatprep.subr.bf16.mxu0 %v3156_v44 }
 0x951   : > { %2506 = vmatpush3.bf16.msra.mxu0 %v2737_v42  ;;  %v2761_v42 = vld [vmem:[#allocation12 + $0x70] ss:$8 sps:$4 sm:$0xff]  }
 0x952   : > { %2517 = vmatprep.subr.bf16.mxu0 %v3156_v44 }
 0xa17   : > { %v1313_v18 = vpop.f32.mrb[4].mxu0 }
 0xa18   : > { %v3761_v20 = vadd.f32 %v1368_v10, %v1313_v18  ;;  %v2481_v21 = vpop.f32.mrb[5].mxu0 }
 0xa19   : > { %v1316_v22 = vpop.f32.mrb[6].mxu0 }
 0xa1a   : > { %v2482_v23 = vpop.f32.mrb[7].mxu0 }
 0xa1f   : > { %v1418_v24 = vpop.f32.mrb[8].mxu0 }
 0xa20   : > { %v1419_v25 = vadd.f32 %v1418_v24, %v3712_v19  ;;  %v2495_v1 = vpop.f32.mrb[9].mxu0 }
 0xa21   : > { %v1421_v26 = vpop.f32.mrb[10].mxu0 }
 0xa22   : > { %v2496_v27 = vpop.f32.mrb[11].mxu0  ;;  %v1424_v28 = vsel %vm1095_vm5, %v1419_v25, -inf }
 0xa23   : > { %1425 = vmax.xlane.f32.xlu1 %v1424_v28  ;;  %v2742_v28 = vld [vmem:[#allocation12 + $0x4] ss:$8 sps:$4 sm:$0xff]  }
 0xa34   : > { %1541 = vrot.lane.b32.xlu1 %v3691_v5, %s3160_s6 }
 0xa38   : > { %1539 = vrot.lane.b32.xlu1 %v3699_v14, %s3160_s6 }
 0xab0   : > { %v1426_v29 = vpop.xlane.xlu1 %1425 }
 0xab1   : > { %v1427_v31 = vsub.f32 %v1419_v25, %v1426_v29  ;;  %v2740_v29 = vld [vmem:[#allocation12] ss:$8 sps:$4 sm:$0xff]  }
 0xab3   : > { %v1428_v32 = vmul.f32 1.442695, %v1427_v31  ;;  %v2745_v31 = vld [vmem:[#allocation12 + $0x14] ss:$8 sps:$4 sm:$0xff]  }
 0xab4   : > { %v1542_v38 = vpop.permute.xlu1 %1541 }
 0xab5   : > { %2792 = vpow2.f32 %v1428_v32  ;;  %v1547_v39 = vsel %vm1048_vm3, %v1542_v38, 0  ;;  %v2743_v32 = vld [vmem:[#allocation12 + $0x10] ss:$8 sps:$4 sm:$0xff]   ;;  %v2760_v38 = vld [vmem:[#allocation12 + $0x64] ss:$8 sps:$4 sm:$0xff]  }
 0xab8   : > { %v1540_v41 = vpop.permute.xlu1 %1539 }
 0xabf   : > { %v2793_v33 = vpop.eup %2792 }
 0xac0   : > { %v1430_v34 = vsel %vm1095_vm5, %v2793_v33, 0.0 }
 0xac1   : > { %1431 = vadd.xlane.f32.xlu0 %v1430_v34  ;;  %v2751_v34 = vld [vmem:[#allocation12 + $0x34] ss:$8 sps:$4 sm:$0xff]  }
 0xad7   : > { %1436 = vrot.lane.b32.xlu0 %v3721_v30, %s3159_s17  ;;  %s2367_s17 = sshll.u32 %s3997_s14, 1 }
 0xb4e   : > { %v1432_v36 = vpop.xlane.xlu0 %1431 }
 0xb4f   : > { %2794 = vrcp.f32 %v1432_v36  ;;  %v2754_v36 = vld [vmem:[#allocation12 + $0x44] ss:$8 sps:$4 sm:$0xff]  }
 0xb52   : > { %v1437_v5 = vpop.permute.xlu0 %1436 }
 0xb53   : > { %2498 = vmatpush3.bf16.msra.mxu1 %v1437_v5  ;;  %v2752_v5 = vld [vmem:[#allocation12 + $0x40] ss:$8 sps:$4 sm:$0xff]  }
 0xb54   : > { %2511 = vmatprep.subr.bf16.mxu1 %v3156_v44 }
 0xb59   : > { %v2795_v14 = vpop.eup %2794 }
 0xb5a   : > { %v1434_v37 = vmul.f32 %v2795_v14, %v2793_v33  ;;  %v2746_v33 = vld [vmem:[#allocation12 + $0x20] ss:$8 sps:$4 sm:$0xff]   ;;  %v2757_v14 = vld [vmem:[#allocation12 + $0x54] ss:$8 sps:$4 sm:$0xff]  }
 0xb5c   : > { %v1435_v40 = vpack.c.bf16 %v1434_v37, %v1434_v37  ;;  %v2755_v37 = vld [vmem:[#allocation12 + $0x50] ss:$8 sps:$4 sm:$0xff]  }
 0xb5e   : > { %2500 = vmatmul.mubr.msk.bf16.vlgmr.msra.gmra.mrb[20].mxu1 %vm1095_vm5, %v1435_v40  ;;  %v2758_v40 = vld [vmem:[#allocation12 + $0x60] ss:$8 sps:$4 sm:$0xff]  }
 0xb5f   : > { %2512 = vmatpush3.bf16.xpose.msra.mxu1 %v1547_v39  ;;  %2513 = vmatprep.mubr.msk.bf16.mxu1 %vm3157_vm0, %v3156_v44  ;;  %v3161_v39 = vmov 0  }
 0xb60   : > { %2523 = vmatprep.subr.bf16.mxu1 %v3156_v44 }
 0xb66   : > { %2514 = vmatmul.mubr.msk.bf16.vlgmr.msra.gmra.mrb[24].mxu1 %vm1048_vm3, %v1540_v41  ;;  %v2763_v41 = vld [vmem:[#allocation12 + $0x74] ss:$8 sps:$4 sm:$0xff]  }
 0xb67   : > { %2527 = vmatprep.mubr.msk.bf16.mxu1 %vm3157_vm0, %v3156_v44 }
 0xc31   : > { %v1476_v43 = vpop.f32.mrb[20].mxu1 }
 0xc32   : > { %v1482_v45 = vpack.c.bf16 %v1476_v43, %v1476_v43  ;;  %v2501_v46 = vpop.f32.mrb[21].mxu1  ;;  %v2764_v43 = vld [vmem:[#allocation14 + $0x40] sm:$0xff]  }
 0xc33   : > { %v1479_v47 = vpop.f32.mrb[22].mxu1  ;;  %v2766_v46 = vld [vmem:[#allocation14 + $0x48] sm:$0xff]  }
 0xc34   : > { %v2502_v48 = vpop.f32.mrb[23].mxu1  ;;  %2508 = vmatmul.mubr.msk.bf16.vlgmr.msra.gmra.mrb[12].mxu0 %vm1048_vm3, %v1482_v45  ;;  %v2765_v45 = vld [vmem:[#allocation14] sm:$0xff]   ;;  %v2767_v47 = vld [vmem:[#allocation14 + $0x8] sm:$0xff]  }
 0xc35   : > { %2519 = vmatprep.mubr.msk.bf16.mxu0 %vm3157_vm0, %v3156_v44  ;;  %v2768_v48 = vld [vmem:[#allocation14 + $0x50] sm:$0xff]  }
 0xc39   : > { %v1583_v49 = vpop.f32.mrb[24].mxu1 }
 0xc3a   : > { %v1584_v50 = vadd.f32 %v1583_v49, %v3712_v19  ;;  %v2515_v51 = vpop.f32.mrb[25].mxu1  ;;  %v2738_v19 = vld [vmem:[#allocation11 + $0x30] sm:$0xff]  }
 0xc3b   : > { %v1586_v52 = vpop.f32.mrb[26].mxu1  ;;  %2524 = vmatpush3.bf16.msra.mxu1 %v2738_v19  ;;  %v2769_v49 = vld [vmem:[#allocation14 + $0x10] sm:$0xff]   ;;  %v2771_v51 = vld [vmem:[#allocation14 + $0x18] sm:$0xff]  }
 0xc3c   : > { %v2516_v53 = vpop.f32.mrb[27].mxu1  ;;  %v1589_v54 = vsel %vm1095_vm5, %v1584_v50, -inf  ;;  %2525 = vmatprep.subr.bf16.mxu1 %v3156_v44  ;;  %v2772_v52 = vld [vmem:[#allocation14 + $0x60] sm:$0xff]  }
 0xc3d   : > { %1590 = vmax.xlane.f32.xlu0 %v1589_v54  ;;  %v2773_v53 = vld [vmem:[#allocation14 + $0x20] sm:$0xff]   ;;  %v2774_v54 = vld [vmem:[#allocation14 + $0x68] sm:$0xff]  }
 0xc3f   : > { %2526 = vmatpush3.bf16.msra.mxu1 %v2739_v61 }
 0xc40   : > { %2409 = vmatprep.subr.bf16.mxu1 %v2764_v43 }
 0xc53   : > { %1601 = vrot.lane.b32.xlu0 %v3721_v30, %s3160_s6  ;;  %s2090_s6 = sadd.s32 %s3998_s13, %s2367_s17 }
 0xc54   : > { %s2368_s9 = sshll.u32 %s2090_s6, 7 }
 0xcca   : > { %v1591_v55 = vpop.xlane.xlu0 %1590 }
 0xccb   : > { %v1592_v56 = vsub.f32 %v1584_v50, %v1591_v55  ;;  %v2770_v50 = vld [vmem:[#allocation14 + $0x58] sm:$0xff]   ;;  %v2775_v55 = vld [vmem:[#allocation14 + $0x28] sm:$0xff]  }
 0xccd   : > { %v1593_v57 = vmul.f32 1.442695, %v1592_v56 }
 0xcce   : > { %v1602_v60 = vpop.permute.xlu0 %1601 }
 0xccf   : > { %2796 = vpow2.f32 %v1593_v57  ;;  %2518 = vmatpush3.bf16.msra.mxu0 %v1602_v60 }
 0xcd0   : > { %1856 = vmatprep.subr.bf16.mxu0 %v2742_v28 }
 0xcd9   : > { %v2797_v58 = vpop.eup %2796 }
 0xcda   : > { %v1595_v59 = vsel %vm1095_vm5, %v2797_v58, 0.0 }
 0xcdb   : > { %1596 = vadd.xlane.f32.xlu1 %v1595_v59 }
 0xd07   : > { %v1532_v62 = vpop.f32.mrb[12].mxu0 }
 0xd08   : > { %v1538_v63 = vadd.f32 %v1532_v62, %v3761_v20  ;;  %v2509_v30 = vpop.f32.mrb[13].mxu0 }
 0xd09   : > { %v1535_v2 = vpop.f32.mrb[14].mxu0 }
 0xd0a   : > { %v2510_v3 = vpop.f32.mrb[15].mxu0 }
 0xd0b   : > { %v2332_v3 = vld [vmem:[%s3995_s30] ss:$0 sm:$0xff]  ;;  %s3830_s30 = scalar_lea.hbm %s4000_s21, %s2368_s9 }
 0xd68   : > { %v1597_v4 = vpop.xlane.xlu1 %1596 }
 0xd69   : > { %2798 = vrcp.f32 %v1597_v4 }
 0xd73   : > { %v2799_v6 = vpop.eup %2798 }
 0xd74   : > { %v1599_v7 = vmul.f32 %v2799_v6, %v2797_v58 }
 0xd76   : > { %v1600_v8 = vpack.c.bf16 %v1599_v7, %v1599_v7 }
 0xd78   : > { %2520 = vmatmul.mubr.msk.bf16.vlgmr.msra.gmra.mrb[16].mxu0 %vm1095_vm5, %v1600_v8  ;;  %v2776_v8 = vld [vmem:[#allocation14 + $0x70] sm:$0xff]  }
 0xd79   : > { %1857 = vmatpush1.bf16.msra.mxu0 %v2740_v29  ;;  %1888 = vmatprep.mubr.bf16.mxu0 %v3161_v39 }
 0xd7a   : > { %1858 = vmatprep.subr.bf16.mxu0 %v2745_v31 }
 0xd7d   : > { %1859 = vmatpush1.bf16.msra.mxu0 %v2743_v32 }
 0xe4b   : > { %v1641_v9 = vpop.f32.mrb[16].mxu0 }
 0xe4c   : > { %v1647_v10 = vpack.c.bf16 %v1641_v9, %v1641_v9  ;;  %v2521_v11 = vpop.f32.mrb[17].mxu0  ;;  %v2777_v9 = vld [vmem:[#allocation14 + $0x30] sm:$0xff]  }
 0xe4d   : > { %v1644_v12 = vpop.f32.mrb[18].mxu0  ;;  %v2779_v11 = vld [vmem:[#allocation14 + $0x38] sm:$0xff]  }
 0xe4e   : > { %v2522_v13 = vpop.f32.mrb[19].mxu0  ;;  %2528 = vmatmul.mubr.msk.bf16.vlgmr.msra.gmra.mrb[28].mxu1 %vm1048_vm3, %v1647_v10  ;;  %v2778_v10 = vld [vmem:[#allocation14 + $0x78] sm:$0xff]   ;;  %v1764_v12 = vld [vmem:[%s3996_s12] sm:$0x3]  ;;  %s3162_s12 = smov [#allocation15]  }
 0xe4f   : > { %2410 = vmatpush3.bf16.msra.mxu1 %v2765_v45  ;;  %v1772_v13 = vsub.s32 1, %v3705_v16  ;;  %s3008_s14 = sshll.u32 %s3162_s12, 4  ;;  %s3009_s14 = int_to_ptr.vmem [resolvable:$false] %s3008_s14 }
 0xe50   : > { %2411 = vmatprep.subr.bf16.mxu1 %v2766_v46  ;;  %s3010_s13 = scalar_lea.vmem %s3009_s14, 256  ;;  %p3011_p13 = scmp.lt.s32.totalorder %s3832_s5, %s3009_s14 }
 0xe51   : > { %p3012_p8 = scmp.lt.s32.totalorder %s3010_s13, %s3004_s23 }
 0xe53   : > { %2412 = vmatpush3.bf16.msra.mxu1 %v2767_v47  ;;  %p3013_p4 = por %p3012_p8, %p3011_p13 }
 0xe54   : > { %2413 = vmatprep.subr.bf16.mxu1 %v2768_v48 }
 0xe55   : > { %p3014_p9 = pnand %p3013_p4, %p3007_p7 }
 0xe57   : > { %2414 = vmatpush3.bf16.msra.mxu1 %v2769_v49 }
 0xe58   : > { %2415 = vmatprep.subr.bf16.mxu1 %v2770_v50 }
 0xe5b   : > { %2416 = vmatpush3.bf16.msra.mxu1 %v2771_v51 }
 0xe5c   : > { %2417 = vmatprep.subr.bf16.mxu1 %v2772_v52 }
 0xe5f   : > { %2418 = vmatpush3.bf16.msra.mxu1 %v2773_v53 }
 0xe60   : > { %2419 = vmatprep.subr.bf16.mxu1 %v2774_v54 }
 0xe63   : > { %2420 = vmatpush3.bf16.msra.mxu1 %v2775_v55 }
 0xe64   : > { %2421 = vmatprep.subr.bf16.mxu1 %v2776_v8 }
 0xe67   : > { %2422 = vmatpush3.bf16.msra.mxu1 %v2777_v9 }
 0xe68   : > { %2423 = vmatprep.subr.bf16.mxu1 %v2778_v10 }
 0xe6b   : > { %2424 = vmatpush3.bf16.msra.mxu1 %v2779_v11 }
 0xf21   : > { %v1697_v44 = vpop.f32.mrb[28].mxu1 }
 0xf22   : > { %v1703_v18 = vadd.f32 %v1697_v44, %v1538_v63  ;;  %v2529_v20 = vpop.f32.mrb[29].mxu1  ;;  %v2331_v63 = vld [vmem:[%s3994_s11] ss:$0 sm:$0xff]  ;;  %v1769_v44 = vrot.slane %v1764_v12, %v1045_v17 }
 0xf23   : > { %v1700_v21 = vpop.f32.mrb[30].mxu1  ;;  %v2349_v17 = vld [vmem:[%s3999_s8] ss:$0 sm:$0xff] }
 0xf24   : > { %v1711_v22 = vadd.f32 %v2330_v15, %v1703_v18  ;;  %v2530_v23 = vpop.f32.mrb[31].mxu1  ;;  %v1773_v15 = vrot.slane %v1764_v12, %v1772_v13 }
 0xf26   : > { %v3799_v24 = vadd.f32 %v1711_v22, %v3653_v0  ;;  %v2748_v0 = vld [vmem:[#allocation12 + $0x24] ss:$8 sps:$4 sm:$0xff]  }
 0xf27   : > { %1860 = vmatprep.subr.bf16.mxu0 %v2748_v0 }
 0xf28   : > { %1715 = vadd.xlane.f32.xlu1 %v3799_v24  ;;  %1861 = vmatpush1.bf16.msra.mxu0 %v2746_v33 }
 0xf29   : > { %1862 = vmatprep.subr.bf16.mxu0 %v2751_v34 }
 0xf2c   : > { %1863 = vmatpush1.bf16.msra.mxu0 %v2749_v35 }
 0xf2d   : > { %1864 = vmatprep.subr.bf16.mxu0 %v2754_v36 }
 0xf30   : > { %1865 = vmatpush1.bf16.msra.mxu0 %v2752_v5 }
 0xf31   : > { %1866 = vmatprep.subr.bf16.mxu0 %v2757_v14 }
 0xf34   : > { %1867 = vmatpush1.bf16.msra.mxu0 %v2755_v37 }
 0xf35   : > { %1868 = vmatprep.subr.bf16.mxu0 %v2760_v38 }
 0xf38   : > { %1869 = vmatpush1.bf16.msra.mxu0 %v2758_v40 }
 0xf39   : > { %1870 = vmatprep.subr.bf16.mxu0 %v2763_v41 }
 0xf3c   : > { %1871 = vmatpush1.bf16.msra.mxu0 %v2761_v42 }
 0xfb5   : > { %v1716_v25 = vpop.xlane.xlu1 %1715 }
 0xfb6   : > { %v1717_v1 = vmul.f32 0.0078125, %v1716_v25 }
 0xfb8   : > { %v3803_v26 = vsub.f32 %v3799_v24, %v1717_v1 }
 0xfba   : > { %v1719_v27 = vmul.f32 %v3803_v26, %v3803_v26  ;;  %v1738_v30 = vmul.f32 %v2331_v63, %v3803_v26 }
 0xfbc   : > { %1720 = vadd.xlane.f32.xlu1 %v1719_v27 }
0x1049   : > { %v1721_v56 = vpop.xlane.xlu1 %1720 }
0x104a   : > { %v1722_v57 = vmul.f32 0.007874016, %v1721_v56 }
0x104c   : > { %2800 = vrsqrt.f32 %v1722_v57  ;;  %vm1725_vm6 = vcmp.eq.f32.partialorder %v1722_v57, inf  ;;  %v1728_v60 = vand.u32 2147483648, %v1722_v57  ;;  %vm1727_vm7 = vcmp.eq.f32.partialorder %v1722_v57, 0.0 }
0x1056   : > { %v2801_v58 = vpop.eup %2800 }
0x1057   : > { %v1724_v59 = vmul.f32 %v2801_v58, %v1722_v57 }
0x1059   : > { %v1726_v19 = vsel %vm1725_vm6, %v1722_v57, %v1724_v59 }
0x105a   : > { %v1729_v61 = vsel %vm1727_vm7, %v1728_v60, %v1726_v19 }
0x105b   : > { %v1730_v62 = vadd.f32 1e-06, %v1729_v61 }
0x105d   : > { %2802 = vrcp.f32 %v1730_v62 }
0x1067   : > { %v2803_v2 = vpop.eup %2802 }
0x1068   : > { %v1739_v4 = vmul.f32 %v2803_v2, %v1738_v30 }
0x106a   : > { %v1746_v6 = vadd.f32 %v2332_v3, %v1739_v4 }
0x106c   : > { %v1747_v7 = vpack.c.bf16 %v1746_v6, %v1746_v6 }
0x106e   : > { %1889 = vmatmul.mubr.bf16.vlgmr.msra.gmra.mrb[20].mxu0 %v1747_v7 }
0x1141   : > { %v1890_v18 = vpop.f32.mrb[20].mxu0 }
0x1142   : > { %v1891_v20 = vadd.f32 %v1890_v18, %v1769_v44  ;;  %v1892_v21 = vpop.f32.mrb[21].mxu0 }
0x1143   : > { %v1893_v22 = vadd.f32 %v1892_v21, %v1773_v15  ;;  %v1894_v23 = vpop.f32.mrb[22].mxu0 }
0x1144   : > { %v1897_v25 = vmax.f32 %v1891_v20, 0.0  ;;  %v1895_v1 = vpop.f32.mrb[23].mxu0 }
0x1145   : > { %v1898_v26 = vmax.f32 %v1893_v22, 0.0 }
0x1146   : > { %v1899_v28 = vpack.c.bf16 %v1897_v25, %v1897_v25 }
0x1147   : > { %v1900_v27 = vpack.c.bf16 %v1898_v26, %v1898_v26 }
0x1149   : > { %2068 = vmatprep.mubr.bf16.mxu1 %v1900_v27 }
0x114a   : > { %2069 = vmatmul.mubr.bf16.vlgmr.msra.gmra.mrb[32].mxu1 %v1899_v28 }
0x121d   : > { %v2425_v16 = vpop.f32.mrb[32].mxu1 }
0x121e   : > { %v2426_v29 = vpop.f32.mrb[33].mxu1 }
0x121f   : > { %v2427_v31 = vadd.f32 %v2426_v29, %v2425_v16  ;;  %v2428_v32 = vpop.f32.mrb[34].mxu1 }
0x1220   : > { %v2429_v0 = vpop.f32.mrb[35].mxu1 }
0x1221   : > { %v2071_v33 = vadd.f32 %v2427_v31, %v2349_v17 }
0x1223   : > { %v2076_v34 = vadd.f32 %v2071_v33, %v3799_v24 }
0x1225   : > { %2077 = vst [vmem:[%s3657_s4] sm:$0xff] %v2076_v34 }
0x1226   : > { %3017 = shalt.err (!%p3014_p9)
}
0x1227   : > { %s3018_s7 = scalar_lea.hbm %s3830_s30, 128  ;;  %s3022_s6 = scalar_lea.hbm %s4000_s21, 512 }
0x1228   : > { %p3019_p0 = scmp.ne.s32.totalorder %s3830_s30, %s3018_s7  ;;  %p3023_p3 = scmp.lt.u32.totalorder %s3830_s30, %s4000_s21 }
0x1229   : > { %p3024_p6 = scmp.lt.u32.totalorder %s3022_s6, %s3018_s7  ;;  %p3026_p10 = scmp.lt.u32.totalorder %s3018_s7, %s3830_s30 }
0x122a   : > { %p3020_p5 = pnand %p3019_p0, %p4001_p1 }
0x122b   : > { %p3025_p11 = por %p3024_p6, %p3023_p3 }
0x122c   : > { %p3021_p12 = pneg %p3020_p5 }
0x122d   : > { %p3027_p2 = por %p3026_p10, %p3025_p11 }
0x122f   : > { %p3028_p7 = pnand %p3027_p2, %p3021_p12 }
0x1231   : > { %3031 = shalt.err (!%p3028_p7)
}
0x1232   : > { %2555 = dma.vmem_to_hbm [thread:$0]  (%p4001_p1), %s3832_s5, 128, %s3830_s30, %s2079_s24  }
0x1233 PF: > { %p2595_p13 = scmp.ge.s32.totalorder %s3142_s1, 2  ;;  %s2106_s8 = sand.u32 1, %s3114_s27  }
0x1234   : > { %p4002_p8 = scmp.ne.s32.totalorder %s3969_s2, 0  ;;  %s2107_s9 = scalar_lea.sflag [#allocation5], %s2106_s8 }
0x1236   : > { %p2581_p4 = pnand %p2595_p13, %p4002_p8 }
0x1238   : > { %3097 = dma.done.wait (!%p2581_p4), %s2107_s9, 128  }
0x1239   : > { %3099 = vsyncadd (!%p2581_p4), %s2107_s9, 4294967168  ;;  %s38_s1 = sadd.s32 1, %s3142_s1   ;;  %s4003_s5 = sld [smem:[#allocation24_spill]] }
0x123a   : > { %p35_p9 = scmp.ge.s32.totalorder %s38_s1, 6   ;;  %s4004_s11 = sld [smem:[#allocation25_spill]] }
0x123b   : > { %s4005_s24 = smov %s3106_s25  ;;  %s4006_s25 = smov %s3110_s26 }
0x123c   : > { %s4007_s26 = smov %s3501_s10  ;;  %s4008_s27 = smov %s3118_s28 }
0x123d   : > { %s4009_s28 = smov %s3122_s29  ;;  %s4010_s29 = smov %s3504_s16 }
0x123e   : > { %s4011_s0 = smov %s3134_s18  ;;  %s4012_s30 = smov %s3138_s19 }
0x123f   : > { %s4013_s18 = smov %s4003_s5  ;;  %37 = sbr.rel (!%p35_p9) target bundleno = 32 (0x20), region = 173 }
0x1240   : > { %s4014_s19 = smov %s4004_s11 }
0x1246   :  { %2112 = vsyncpa [#allocation4], 1 }
0x1247   :  { %2114 = vsyncpa [#allocation4 + $0x1], 1 }
0x1248   :  { %2115 = vsyncpa [#allocation7], 1 }
0x1249   :  { %2117 = vsyncpa [#allocation7 + $0x1], 1 }
0x124a   :  { %2118 = vsyncpa [#allocation10], 1 }
0x124b   :  { %2119 = vsyncpa [#allocation13], 1 }
0x124c   :  { %2120 = vsyncpa [#allocation5], 1 }
0x124d   :  { %2122 = vsyncpa [#allocation5 + $0x1], 1 }

</bundles_post_ra>
